<compile_context>
chip_gen: v7x
topology: tpu7x:2x2x1
jax: 0.10.0
libtpu: 0.0.40
codegen_flags: <defaults>
</compile_context>

<pallas_src>
import jax
import jax.numpy as jnp
from jax.experimental import pallas as pl
from jax.experimental.pallas import tpu as pltpu


_LANE = 128
_LANE_CANDIDATES = (2048, 1024, 512, 256, 128)   # preferred lane-dense widths
_TARGET_BLOCK_BYTES = 8 * 1024 * 1024            # ~8 MiB per pipeline buffer
_VMEM_LIMIT_BYTES = 48 * 1024 * 1024             # 4 x 8 MiB buffers + headroom
_SMALL_BYPASS_BYTES = 64 * 1024                  # let XLA fuse tiny tensors
_MIN_SPLIT_BYTES = 1 * 1024 * 1024               # min half-size to split 1 block


def _swish_kernel(x_ref, o_ref):
    # Compute in f32 (free in a memory-bound kernel; avoids bf16-ulp drift and
    # v5e's lack of bf16 VPU/EUP).  sigmoid(x) = 0.5*(1 + tanh(x/2)): one EUP
    # op + ~3 VALU ops, cheaper than exp + exact-divide lowering.
    x = x_ref[...].astype(jnp.float32)
    y = 0.5 * x * (1.0 + jnp.tanh(0.5 * x))
    o_ref[...] = y.astype(o_ref.dtype)


def _round_up(n, m):
    return ((n + m - 1) // m) * m


def _min_sublane(dtype):
    """Minimum sublane tile so packed vregs stay full for sub-32-bit dtypes."""
    itemsize = jnp.dtype(dtype).itemsize
    if itemsize >= 4:
        return 8
    if itemsize == 2:
        return 16
    return 32


def _choose_row_tile(rows, lanes, itemsize, sublane):
    """Row tile targeting ~8 MiB blocks, aligned to the dtype's sublane tile."""
    tm = max(sublane, _TARGET_BLOCK_BYTES // (lanes * itemsize))
    tm = (tm // sublane) * sublane
    if tm >= rows:
        # Whole array fits in one block.  Split into 2 grid steps only when
        # each half is still large enough that the per-step overhead is noise
        # (lets both v7x TensorCores pull from HBM; harmless on 1-TC chips).
        half_bytes = (rows // 2) * lanes * itemsize
        if rows >= 2 * sublane and half_bytes >= _MIN_SPLIT_BYTES:
            tm = _round_up((rows + 1) // 2, sublane)
        else:
            tm = rows  # full-extent block (allowed even if not sublane-aligned)
    return tm


def _pallas_swish_2d(x2, tm):
    rows, lanes = x2.shape
    grid = (pl.cdiv(rows, tm),)  # partial last block handled by Pallas masking
    return pl.pallas_call(
        _swish_kernel,
        out_shape=jax.ShapeDtypeStruct((rows, lanes), x2.dtype),
        grid_spec=pltpu.PrefetchScalarGridSpec(
            num_scalar_prefetch=0,
            grid=grid,
            in_specs=[pl.BlockSpec((tm, lanes), lambda i: (i, 0))],
            out_specs=pl.BlockSpec((tm, lanes), lambda i: (i, 0)),
        ),
        compiler_params=pltpu.CompilerParams(
            dimension_semantics=("parallel",),
            vmem_limit_bytes=_VMEM_LIMIT_BYTES,
        ),
    )(x2)


def _swish_flat(flat, itemsize):
    """Swish over a flat array whose length is a multiple of 128."""
    n = flat.shape[0]
    sublane = _min_sublane(flat.dtype)

    # Widest lane candidate that still gives >= one full sublane tile of rows.
    lanes = None
    for cand in _LANE_CANDIDATES:
        if n % cand == 0 and (n // cand) >= sublane:
            lanes = cand
            break
    if lanes is None:  # very skinny input (only reachable near the bypass cut)
        for cand in _LANE_CANDIDATES:
            if n % cand == 0:
                lanes = cand
                break

    rows = n // lanes
    tm = _choose_row_tile(rows, lanes, itemsize, sublane)
    out = _pallas_swish_2d(flat.reshape(rows, lanes), tm)
    return out.reshape(n)


def swish(x: jnp.ndarray) -> jnp.ndarray:
    """Applies Swish (sigmoid(x) * x) elementwise via a Pallas TPU kernel."""
    orig_shape = x.shape
    n = x.size
    if n == 0:
        return x

    itemsize = jnp.dtype(x.dtype).itemsize
    if n * itemsize <= _SMALL_BYPASS_BYTES:
        # Tiny tensor: the pallas_call + DMA overhead dwarfs the actual
        # traffic; a fused XLA elementwise is strictly faster here.
        return jax.nn.sigmoid(x) * x

    flat = x.reshape(-1)  # contiguous reshape: metadata only, no copy
    rem = n % _LANE
    if rem == 0:
        return _swish_flat(flat, itemsize).reshape(orig_shape)

    # Non-128-divisible size: Pallas handles the 128-divisible bulk, the
    # sub-128-element tail goes through plain jnp (no full-tensor pad/slice).
    bulk = n - rem
    out_bulk = _swish_flat(flat[:bulk], itemsize)
    tail = flat[bulk:]
    out_tail = jax.nn.sigmoid(tail) * tail
    return jnp.concatenate([out_bulk, out_tail]).reshape(orig_shape)


if __name__ == "__main__":
    key = jax.random.PRNGKey(0)

    def ref_swish(a):
        af = a.astype(jnp.float32)
        return (jax.nn.sigmoid(af) * af).astype(a.dtype)

    # 1) Primary module-shaped input (tiny -> XLA bypass path).
    x = jax.random.normal(key, (2, 4, 16, 16), dtype=jnp.float32)
    y = swish(x)
    jax.block_until_ready(y)
    assert y.shape == x.shape and y.dtype == x.dtype
    assert jnp.allclose(y, ref_swish(x), atol=1e-5, rtol=1e-5)

    # 2) Pallas path, single-block tensor split across 2 grid steps.
    k2 = jax.random.fold_in(key, 1)
    x2 = jax.random.normal(k2, (8, 16, 64, 64), dtype=jnp.float32)  # 2 MiB
    y2 = swish(x2)
    jax.block_until_ready(y2)
    assert y2.shape == x2.shape and y2.dtype == x2.dtype
    assert jnp.allclose(y2, ref_swish(x2), atol=1e-5, rtol=1e-5)

    # 3) Pallas path with non-128-divisible size (bulk kernel + jnp tail).
    k3 = jax.random.fold_in(key, 2)
    x3 = jax.random.normal(k3, (3, 5, 64, 71), dtype=jnp.float32)
    y3 = swish(x3)
    jax.block_until_ready(y3)
    assert y3.shape == x3.shape and y3.dtype == x3.dtype
    assert jnp.allclose(y3, ref_swish(x3), atol=1e-5, rtol=1e-5)

    # 4) bf16 Pallas path (f32 internal compute, bf16 storage).
    k4 = jax.random.fold_in(key, 3)
    x4 = jax.random.normal(k4, (4, 8, 32, 64), dtype=jnp.bfloat16)
    y4 = swish(x4)
    jax.block_until_ready(y4)
    assert y4.shape == x4.shape and y4.dtype == x4.dtype
    assert jnp.allclose(y4.astype(jnp.float32), ref_swish(x4).astype(jnp.float32),
                        atol=2e-2, rtol=2e-2)

    print("KERNEL_OK")
</pallas_src>

<mosaic_0001>
module attributes {stable_mosaic.version = 11 : i64} {
  func.func @_swish_kernel(%arg0: i32, %arg1: memref<128x2048xf32, #tpu.memory_space<vmem>>, %arg2: memref<128x2048xf32, #tpu.memory_space<vmem>>) attributes {dimension_semantics = [#tpu.dimension_semantics<parallel>], iteration_bounds = array<i64: 2>, scalar_prefetch = 0 : i64, scratch_operands = 0 : i64, tpu.core_type = #tpu.core_type<tc>, window_params = [{transform_indices = @transform_0, window_bounds = array<i64: 128, 2048>}, {transform_indices = @transform_1, window_bounds = array<i64: 128, 2048>}]} {
    %c0 = arith.constant 0 : index
    %c0_0 = arith.constant 0 : index
    %0 = vector.load %arg1[%c0, %c0_0] : memref<128x2048xf32, #tpu.memory_space<vmem>>, vector<128x2048xf32>
    %cst = arith.constant 5.000000e-01 : f32
    %1 = vector.broadcast %cst : f32 to vector<128x2048xf32>
    %2 = arith.mulf %1, %0 : vector<128x2048xf32>
    %cst_1 = arith.constant 5.000000e-01 : f32
    %3 = vector.broadcast %cst_1 : f32 to vector<128x2048xf32>
    %4 = arith.mulf %3, %0 : vector<128x2048xf32>
    %5 = math.tanh %4 : vector<128x2048xf32>
    %cst_2 = arith.constant 1.000000e+00 : f32
    %6 = vector.broadcast %cst_2 : f32 to vector<128x2048xf32>
    %7 = arith.addf %6, %5 : vector<128x2048xf32>
    %8 = arith.mulf %2, %7 : vector<128x2048xf32>
    %c0_3 = arith.constant 0 : index
    %c0_4 = arith.constant 0 : index
    %9 = vector.load %arg2[%c0_3, %c0_4] : memref<128x2048xf32, #tpu.memory_space<vmem>>, vector<128x2048xf32>
    tpu.vector_store %arg2[%c0_3, %c0_4], %8 {strides = array<i32>} : memref<128x2048xf32, #tpu.memory_space<vmem>>, vector<128x2048xf32>,
    return
  }
  func.func @transform_0(%arg0: i32) -> (i32, i32) {
    %c0_i32 = arith.constant 0 : i32
    %c0_i32_0 = arith.constant 0 : i32
    return %arg0, %c0_i32 : i32, i32
  }
  func.func @transform_1(%arg0: i32) -> (i32, i32) {
    %c0_i32 = arith.constant 0 : i32
    %c0_i32_0 = arith.constant 0 : i32
    return %arg0, %c0_i32 : i32, i32
  }
}

</mosaic_0001>

<bundles_post_ra>
// kernel: tpu_custom_call.1
= control target key start
LH: loop header
LB: loop body
LE: loop exit
PB: predicated region body
PF: predicated region fallthrough
CT: control target
= control target key end

     0   :  { %6 = vsyncpa [#allocation3], 0  ;;  %s4157_s0 = inlined_call_operand.hbm [shape: f32[256,2048], index: 0, kind: input, shape index: {}]   ;;  %s4158_s1 = inlined_call_operand.hbm [shape: f32[256,2048], index: 1, kind: output, shape index: {}]  }
   0x1   :  { %8 = vsyncpa [#allocation3 + $0x1], 0 }
   0x2   :  { %9 = vsyncpa [#allocation4], 0 }
   0x3   :  { %11 = vsyncpa [#allocation4 + $0x1], 0  ;;  %s2458_s6 = smov 0   ;;  %s2460_s7 = smov 0  }
   0x4   :  { %s2462_s8 = smov 0   ;;  %s2464_s9 = smov 0  }
   0x5 LB: > { %s2479_s10 = sadd.s32 4294967295, %s2440_s9   ;;  %s1762_s11 = sadd.s32 4294967294, %s2440_s9   ;;  %s2440_s9 = sphi %s2464_s9, %s4171_s9   ;;  %s2436_s8 = sphi %s2462_s8, %s4170_s8   ;;  %s2432_s7 = sphi %s2460_s7, %s4169_s7   ;;  %s2428_s6 = sphi %s2458_s6, %s4168_s6  }
   0x6   : > { %s2483_s12 = sadd.s32 1, %s2440_s9   ;;  %s24_s13 = sadd.s32 1, %s2436_s8 }
   0x7   : > { %s21_s14 = ssub.s32 %s2440_s9, %s2483_s12  ;;  %p31_p0 = scmp.ne.s32.totalorder %s2436_s8, %s2432_s7 }
   0x8   : > { %p22_p1 = scmp.eq.s32.totalorder %s21_s14, 0  ;;  %p32_p2 = scmp.eq.s32.totalorder %s2440_s9, 0 }
   0x9   : > { %p37_p3 = scmp.ne.s32.totalorder %s2432_s7, %s2428_s6  ;;  %p38_p4 = scmp.eq.s32.totalorder %s2479_s10, 0 }
   0xa   : > { %s2495_s15 = scalar_select %p22_p1, %s2436_s8, %s24_s13  }
   0xb   : > { %p2497_p5 = por %p32_p2, %p31_p0  ;;  %p2501_p6 = por %p38_p4, %p37_p3 }
   0xc   : > { %p61_p7 = scmp.eq.s32.totalorder %s2479_s10, 1  ;;  %p67_p8 = scmp.eq.s32.totalorder %s1762_s11, 1 }
   0xd   : > { %p1794_p10 = scmp.lt.s32.totalorder %s2440_s9, 2  ;;  %s87_s20 = sand.u32 1, %s2436_s8  }
   0xe   : > { %p2508_p11 = por %p61_p7, %p31_p0  ;;  %p2512_p12 = por %p67_p8, %p37_p3 }
   0xf   : > { %s1779_s21 = sshll.u32 %s2440_s9, 15  ;;  %s1765_s22 = sshll.u32 %s87_s20, 11 }
  0x10   : > { %s4162_s18 = scalar_select %p2508_p11, 1, 0 }
  0x11   : > { %s4163_s19 = scalar_select %p2512_p12, 1, 0 }
  0x12   : > { %s2521_s25 = scalar_lea.hbm %s4157_s0, %s1779_s21  ;;  %s91_s26 = scalar_lea.vmem [#allocation2], %s1765_s22 }
  0x13   : > { %s99_s27 = sshll.u32 %s91_s26, 4  ;;  %p2525_p13 = pnand %p1794_p10, %p2497_p5  ;;  %s2529_s27 = int_to_ptr.vmem [resolvable:$true] %s99_s27 }
  0x14   : > { %s2531_s29 = scalar_lea.sflag [#allocation3], %s87_s20  ;;  %s2344_s30 = scalar_lea.hbm %s2521_s25, 32768 }
  0x15   : > { %p2345_p0 = scmp.ne.s32.totalorder %s2521_s25, %s2344_s30  ;;  %p2346_p1 = pneg %p2525_p13 }
  0x16   : > { %s2349_s4 = scalar_lea.hbm %s4157_s0, 65536  ;;  %p2350_p4 = scmp.lt.u32.totalorder %s2521_s25, %s4157_s0 }
  0x17   : > { %p2347_p2 = pnand %p2346_p1, %p2345_p0  ;;  %p2351_p5 = scmp.lt.u32.totalorder %s2349_s4, %s2344_s30 }
  0x18   : > { %p2353_p8 = scmp.lt.u32.totalorder %s2344_s30, %s2521_s25 }
  0x19   : > { %p2348_p3 = pneg %p2347_p2  ;;  %p2352_p7 = por %p2351_p5, %p2350_p4 }
  0x1b   : > { %p2354_p10 = por %p2353_p8, %p2352_p7 }
  0x1d   : > { %p2355_p9 = pnand %p2354_p10, %p2348_p3 }
  0x1f   : > { %2358 = shalt.err (!%p2355_p9)
}
  0x20   : > { %s2359_s13 = scalar_lea.vmem %s2529_s27, 32768  ;;  %s2442_s14 = smov [#allocation2]  }
  0x21   : > { %p2360_p0 = scmp.ne.s32.totalorder %s2529_s27, %s2359_s13  ;;  %s2364_s16 = sshll.u32 %s2442_s14, 4  ;;  %s2365_s16 = int_to_ptr.vmem [resolvable:$false] %s2364_s16 }
  0x22   : > { %s2366_s20 = scalar_lea.vmem %s2365_s16, 65536  ;;  %p2367_p11 = scmp.lt.s32.totalorder %s2529_s27, %s2365_s16 }
  0x23   : > { %p2362_p2 = pnand %p2360_p0, %p2346_p1  ;;  %p2368_p4 = scmp.lt.s32.totalorder %s2366_s20, %s2359_s13 }
  0x25   : > { %p2363_p12 = pneg %p2362_p2  ;;  %p2369_p5 = por %p2368_p4, %p2367_p11 }
  0x27   : > { %p2370_p7 = pnand %p2369_p5, %p2363_p12 }
  0x29   : > { %2373 = shalt.err (!%p2370_p7)
}
  0x2a   : > { %s2443_s21 = smov 2048   ;;  %s2444_s22 = smov 128  }
  0x2b   : > { %1789 = dma.hbm_to_vmem [thread:$0]  (!%p2525_p13), %s2521_s25, 32768, %s2529_s27, %s2531_s29, %s2443_s21, %s2443_s21, %s2444_s22  }
  0x2c   : > { %p1769_p9 = scmp.ge.s32.totalorder %s2440_s9, 1  ;;  %p107_p1 = scmp.lt.s32.totalorder %s2440_s9, 3 }
  0x2e   : > { %p108_p3 = pnand %p1769_p9, %p107_p1 }
  0x2f   : > { %s2562_s23 = sand.u32 (!%p108_p3), 1, %s2432_s7  }
  0x30   : > { %111 = sbr.rel (%p108_p3) target bundleno = 344 (0x158), region = 24  ;;  %s1770_s24 = sshll.u32 (!%p108_p3), %s2562_s23, 11 }
  0x31   : > { %s114_s26 = scalar_lea.sflag (!%p108_p3), [#allocation3], %s2562_s23  ;;  %s2568_s30 = scalar_lea.vmem (!%p108_p3), [#allocation2], %s1770_s24 }
  0x37   : > { %2419 = dma.done.wait (%p2501_p6), %s114_s26, 32768  }
  0x38   : > { %2421 = vsyncadd (%p2501_p6), %s114_s26, 4294934528  ;;  %v138_v0 = vld [vmem:[%s2568_s30] sm:$0xff]  ;;  %v139_v1 = vld [vmem:[%s2568_s30 + $0x8] sm:$0xff]  ;;  %s2645_s17 = scalar_lea.vmem [#allocation5], %s1770_s24  ;;  %s1781_s25 = sshll.u32 %s2479_s10, 15 }
  0x39   : > { %v140_v2 = vld [vmem:[%s2568_s30 + $0x10] sm:$0xff]  ;;  %v394_v3 = vmul.f32 0.5, %v138_v0  ;;  %v395_v4 = vmul.f32 0.5, %v139_v1  ;;  %v141_v6 = vld [vmem:[%s2568_s30 + $0x18] sm:$0xff]  ;;  %v142_v7 = vld [vmem:[%s2568_s30 + $0x20] sm:$0xff]  ;;  %s1689_s27 = sshll.u32 %s2645_s17, 4  ;;  %s4107_s10 = scalar_lea.hbm %s4158_s1, %s1781_s25  ;;  %s4109_s27 = int_to_ptr.vmem [resolvable:$true] %s1689_s27 }
  0x3a   : > { %v2577_v5 = vmul.f32 0.5, %v140_v2  ;;  %v143_v8 = vld [vmem:[%s2568_s30 + $0x28] sm:$0xff]  ;;  %v2582_v9 = vmul.f32 0.5, %v141_v6  ;;  %v144_v10 = vld [vmem:[%s2568_s30 + $0x30] sm:$0xff]  ;;  %v2585_v11 = vmul.f32 0.5, %v142_v7  ;;  %v145_v12 = vld [vmem:[%s2568_s30 + $0x38] sm:$0xff] }
  0x3b   : > { %1832 = vtanh.f32 %v394_v3  ;;  %v2588_v13 = vmul.f32 0.5, %v143_v8  ;;  %v146_v14 = vld [vmem:[%s2568_s30 + $0x40] sm:$0xff]  ;;  %v2592_v15 = vmul.f32 0.5, %v144_v10  ;;  %v147_v16 = vld [vmem:[%s2568_s30 + $0x48] sm:$0xff]  ;;  %v2596_v17 = vmul.f32 0.5, %v145_v12  ;;  %v148_v18 = vld [vmem:[%s2568_s30 + $0x50] sm:$0xff] }
  0x3c   : > { %1834 = vtanh.f32 %v395_v4  ;;  %v2600_v19 = vmul.f32 0.5, %v146_v14  ;;  %v149_v20 = vld [vmem:[%s2568_s30 + $0x58] sm:$0xff]  ;;  %v2604_v21 = vmul.f32 0.5, %v147_v16  ;;  %v150_v22 = vld [vmem:[%s2568_s30 + $0x60] sm:$0xff]  ;;  %v2608_v23 = vmul.f32 0.5, %v148_v18  ;;  %v151_v24 = vld [vmem:[%s2568_s30 + $0x68] sm:$0xff] }
  0x3d   : > { %1836 = vtanh.f32 %v2577_v5  ;;  %v2612_v25 = vmul.f32 0.5, %v149_v20  ;;  %v152_v26 = vld [vmem:[%s2568_s30 + $0x70] sm:$0xff]  ;;  %v2616_v27 = vmul.f32 0.5, %v150_v22  ;;  %v153_v28 = vld [vmem:[%s2568_s30 + $0x78] sm:$0xff]  ;;  %v2620_v29 = vmul.f32 0.5, %v151_v24  ;;  %v154_v30 = vld [vmem:[%s2568_s30 + $0x80] sm:$0xff] }
  0x3e   : > { %1838 = vtanh.f32 %v2582_v9  ;;  %v2624_v32 = vmul.f32 0.5, %v152_v26  ;;  %v155_v33 = vld [vmem:[%s2568_s30 + $0x88] sm:$0xff]  ;;  %v2628_v36 = vmul.f32 0.5, %v153_v28  ;;  %v156_v37 = vld [vmem:[%s2568_s30 + $0x90] sm:$0xff]  ;;  %v2632_v40 = vmul.f32 0.5, %v154_v30  ;;  %v157_v41 = vld [vmem:[%s2568_s30 + $0x98] sm:$0xff] }
  0x3f   : > { %1840 = vtanh.f32 %v2585_v11  ;;  %v2636_v45 = vmul.f32 0.5, %v155_v33  ;;  %v158_v46 = vld [vmem:[%s2568_s30 + $0xa0] sm:$0xff]  ;;  %v2640_v50 = vmul.f32 0.5, %v156_v37  ;;  %v159_v51 = vld [vmem:[%s2568_s30 + $0xa8] sm:$0xff]  ;;  %v2650_v55 = vmul.f32 0.5, %v157_v41  ;;  %v160_v56 = vld [vmem:[%s2568_s30 + $0xb0] sm:$0xff] }
  0x40   : > { %1842 = vtanh.f32 %v2588_v13  ;;  %v2656_v60 = vmul.f32 0.5, %v158_v46  ;;  %v161_v61 = vld [vmem:[%s2568_s30 + $0xb8] sm:$0xff]  ;;  %v2662_v1 = vmul.f32 0.5, %v159_v51  ;;  %v162_v2 = vld [vmem:[%s2568_s30 + $0xc0] sm:$0xff]  ;;  %v2668_v6 = vmul.f32 0.5, %v160_v56  ;;  %v163_v7 = vld [vmem:[%s2568_s30 + $0xc8] sm:$0xff] }
  0x41   : > { %1844 = vtanh.f32 %v2592_v15  ;;  %v164_v12 = vld [vmem:[%s2568_s30 + $0xd0] sm:$0xff]  ;;  %v2680_v18 = vmul.f32 0.5, %v162_v2  ;;  %v165_v20 = vld [vmem:[%s2568_s30 + $0xd8] sm:$0xff]  ;;  %v2686_v26 = vmul.f32 0.5, %v163_v7  ;;  %v166_v28 = vld [vmem:[%s2568_s30 + $0xe0] sm:$0xff]  ;;  %s1675_s2 = scalar_lea.sflag [#allocation4], %s2562_s23 }
  0x42   : > { %1846 = vtanh.f32 %v2596_v17  ;;  %v2692_v33 = vmul.f32 0.5, %v164_v12  ;;  %s2374_s3 = scalar_lea.vmem %s4109_s27, 32768  ;;  %p4165_p11 = scmp.ne.s32.totalorder %s4162_s18, 0 }
  0x43   : > { %1848 = vtanh.f32 %v2600_v19  ;;  %p2375_p6 = scmp.ne.s32.totalorder %s4109_s27, %s2374_s3  ;;  %s2445_s4 = smov [#allocation5]  }
  0x44   : > { %1850 = vtanh.f32 %v2604_v21  ;;  %s2378_s5 = sshll.u32 %s2445_s4, 4  ;;  %s2379_s5 = int_to_ptr.vmem [resolvable:$false] %s2378_s5 }
  0x45   : > { %v1833_v31 = vpop.eup %1832  ;;  %1852 = vtanh.f32 %v2608_v23  ;;  %p2376_p12 = pnand %p2375_p6, %p4165_p11  ;;  %s2380_s11 = scalar_lea.vmem %s2379_s5, 65536 }
  0x46   : > { %v1835_v34 = vpop.eup %1834  ;;  %v906_v35 = vadd.f32 1.0, %v1833_v31  ;;  %1854 = vtanh.f32 %v2612_v25  ;;  %p2381_p8 = scmp.lt.s32.totalorder %s4109_s27, %s2379_s5  ;;  %p2382_p10 = scmp.lt.s32.totalorder %s2380_s11, %s2374_s3 }
  0x47   : > { %v1837_v38 = vpop.eup %1836  ;;  %v907_v39 = vadd.f32 1.0, %v1835_v34  ;;  %1856 = vtanh.f32 %v2616_v27  ;;  %v167_v34 = vld [vmem:[%s2568_s30 + $0xe8] sm:$0xff]  ;;  %p2377_p13 = pneg %p2376_p12 }
  0x48   : > { %v1839_v42 = vpop.eup %1838  ;;  %v1162_v43 = vmul.f32 %v906_v35, %v394_v3  ;;  %v908_v44 = vadd.f32 1.0, %v1837_v38  ;;  %1858 = vtanh.f32 %v2620_v29  ;;  %v2698_v38 = vmul.f32 0.5, %v165_v20  ;;  %p2383_p0 = por %p2382_p10, %p2381_p8 }
  0x49   : > { %v1841_v47 = vpop.eup %1840  ;;  %v1163_v48 = vmul.f32 %v907_v39, %v395_v4  ;;  %v909_v49 = vadd.f32 1.0, %v1839_v42  ;;  %1860 = vtanh.f32 %v2624_v32  ;;  %v168_v39 = vld [vmem:[%s2568_s30 + $0xf0] sm:$0xff] }
  0x4a   : > { %v1843_v52 = vpop.eup %1842  ;;  %1418 = vst [vmem:[%s2645_s17] sm:$0xff] %v1162_v43  ;;  %v1164_v53 = vmul.f32 %v908_v44, %v2577_v5  ;;  %v910_v54 = vadd.f32 1.0, %v1841_v47  ;;  %1862 = vtanh.f32 %v2628_v36  ;;  %v2704_v43 = vmul.f32 0.5, %v166_v28  ;;  %v169_v44 = vld [vmem:[%s2568_s30 + $0xf8] sm:$0xff]  ;;  %p2384_p2 = pnand %p2383_p0, %p2377_p13 }
  0x4b   : > { %v1845_v57 = vpop.eup %1844  ;;  %1419 = vst [vmem:[%s2645_s17 + $0x8] sm:$0xff] %v1163_v48  ;;  %v1165_v58 = vmul.f32 %v909_v49, %v2582_v9  ;;  %v911_v59 = vadd.f32 1.0, %v1843_v52  ;;  %1864 = vtanh.f32 %v2632_v40  ;;  %v2710_v48 = vmul.f32 0.5, %v167_v34  ;;  %v170_v49 = vld [vmem:[%s2568_s30 + $0x100] sm:$0xff] }
  0x4c   : > { %v1847_v62 = vpop.eup %1846  ;;  %1420 = vst [vmem:[%s2645_s17 + $0x10] sm:$0xff] %v1164_v53  ;;  %v1166_v63 = vmul.f32 %v910_v54, %v2585_v11  ;;  %v912_v0 = vadd.f32 1.0, %v1845_v57  ;;  %1866 = vtanh.f32 %v2636_v45  ;;  %v2674_v11 = vmul.f32 0.5, %v161_v61  ;;  %v171_v54 = vld [vmem:[%s2568_s30 + $0x108] sm:$0xff] }
  0x4d   : > { %v1849_v3 = vpop.eup %1848  ;;  %1421 = vst [vmem:[%s2645_s17 + $0x18] sm:$0xff] %v1165_v58  ;;  %v1167_v4 = vmul.f32 %v911_v59, %v2588_v13  ;;  %v913_v5 = vadd.f32 1.0, %v1847_v62  ;;  %1868 = vtanh.f32 %v2640_v50  ;;  %v2716_v53 = vmul.f32 0.5, %v168_v39  ;;  %v172_v59 = vld [vmem:[%s2568_s30 + $0x110] sm:$0xff] }
  0x4e   : > { %v1851_v8 = vpop.eup %1850  ;;  %1422 = vst [vmem:[%s2645_s17 + $0x20] sm:$0xff] %v1166_v63  ;;  %v1168_v9 = vmul.f32 %v912_v0, %v2592_v15  ;;  %v914_v10 = vadd.f32 1.0, %v1849_v3  ;;  %1870 = vtanh.f32 %v2650_v55  ;;  %v2722_v58 = vmul.f32 0.5, %v169_v44  ;;  %v173_v0 = vld [vmem:[%s2568_s30 + $0x118] sm:$0xff] }
  0x4f   : > { %v1853_v13 = vpop.eup %1852  ;;  %1423 = vst [vmem:[%s2645_s17 + $0x28] sm:$0xff] %v1167_v4  ;;  %v1169_v14 = vmul.f32 %v913_v5, %v2596_v17  ;;  %v915_v16 = vadd.f32 1.0, %v1851_v8  ;;  %1872 = vtanh.f32 %v2656_v60  ;;  %v2728_v63 = vmul.f32 0.5, %v170_v49  ;;  %v174_v5 = vld [vmem:[%s2568_s30 + $0x120] sm:$0xff] }
  0x50   : > { %v1855_v15 = vpop.eup %1854  ;;  %1424 = vst [vmem:[%s2645_s17 + $0x30] sm:$0xff] %v1168_v9  ;;  %v1170_v22 = vmul.f32 %v914_v10, %v2600_v19  ;;  %v916_v24 = vadd.f32 1.0, %v1853_v13  ;;  %1874 = vtanh.f32 %v2662_v1  ;;  %v2734_v4 = vmul.f32 0.5, %v171_v54  ;;  %v175_v10 = vld [vmem:[%s2568_s30 + $0x128] sm:$0xff] }
  0x51   : > { %v1857_v17 = vpop.eup %1856  ;;  %1425 = vst [vmem:[%s2645_s17 + $0x38] sm:$0xff] %v1169_v14  ;;  %v1171_v30 = vmul.f32 %v915_v16, %v2604_v21  ;;  %v917_v31 = vadd.f32 1.0, %v1855_v15  ;;  %1876 = vtanh.f32 %v2668_v6  ;;  %v2740_v9 = vmul.f32 0.5, %v172_v59  ;;  %v176_v16 = vld [vmem:[%s2568_s30 + $0x130] sm:$0xff] }
  0x52   : > { %v1859_v19 = vpop.eup %1858  ;;  %1426 = vst [vmem:[%s2645_s17 + $0x40] sm:$0xff] %v1170_v22  ;;  %v1172_v35 = vmul.f32 %v916_v24, %v2608_v23  ;;  %v918_v37 = vadd.f32 1.0, %v1857_v17  ;;  %1878 = vtanh.f32 %v2674_v11  ;;  %v2746_v14 = vmul.f32 0.5, %v173_v0  ;;  %v177_v24 = vld [vmem:[%s2568_s30 + $0x138] sm:$0xff] }
  0x53   : > { %v1861_v21 = vpop.eup %1860  ;;  %1427 = vst [vmem:[%s2645_s17 + $0x48] sm:$0xff] %v1171_v30  ;;  %v1173_v41 = vmul.f32 %v917_v31, %v2612_v25  ;;  %v919_v42 = vadd.f32 1.0, %v1859_v19  ;;  %1880 = vtanh.f32 %v2680_v18  ;;  %v2752_v22 = vmul.f32 0.5, %v174_v5  ;;  %v178_v31 = vld [vmem:[%s2568_s30 + $0x140] sm:$0xff] }
  0x54   : > { %v1863_v23 = vpop.eup %1862  ;;  %1428 = vst [vmem:[%s2645_s17 + $0x50] sm:$0xff] %v1172_v35  ;;  %v1174_v46 = vmul.f32 %v918_v37, %v2616_v27  ;;  %v920_v47 = vadd.f32 1.0, %v1861_v21  ;;  %1882 = vtanh.f32 %v2686_v26  ;;  %v2758_v30 = vmul.f32 0.5, %v175_v10  ;;  %v179_v37 = vld [vmem:[%s2568_s30 + $0x148] sm:$0xff] }
  0x55   : > { %v1865_v25 = vpop.eup %1864  ;;  %1429 = vst [vmem:[%s2645_s17 + $0x58] sm:$0xff] %v1173_v41  ;;  %v1175_v51 = vmul.f32 %v919_v42, %v2620_v29  ;;  %v921_v52 = vadd.f32 1.0, %v1863_v23  ;;  %1884 = vtanh.f32 %v2692_v33  ;;  %v2764_v35 = vmul.f32 0.5, %v176_v16  ;;  %v180_v42 = vld [vmem:[%s2568_s30 + $0x150] sm:$0xff] }
  0x56   : > { %v1867_v27 = vpop.eup %1866  ;;  %1430 = vst [vmem:[%s2645_s17 + $0x60] sm:$0xff] %v1174_v46  ;;  %v1176_v56 = vmul.f32 %v920_v47, %v2624_v32  ;;  %v922_v57 = vadd.f32 1.0, %v1865_v25  ;;  %1886 = vtanh.f32 %v2698_v38  ;;  %v2770_v41 = vmul.f32 0.5, %v177_v24  ;;  %v181_v47 = vld [vmem:[%s2568_s30 + $0x158] sm:$0xff] }
  0x57   : > { %v1869_v29 = vpop.eup %1868  ;;  %1431 = vst [vmem:[%s2645_s17 + $0x68] sm:$0xff] %v1175_v51  ;;  %v1177_v61 = vmul.f32 %v921_v52, %v2628_v36  ;;  %v923_v62 = vadd.f32 1.0, %v1867_v27  ;;  %1888 = vtanh.f32 %v2704_v43  ;;  %v2776_v46 = vmul.f32 0.5, %v178_v31  ;;  %v182_v52 = vld [vmem:[%s2568_s30 + $0x160] sm:$0xff] }
  0x58   : > { %v1871_v32 = vpop.eup %1870  ;;  %1432 = vst [vmem:[%s2645_s17 + $0x70] sm:$0xff] %v1176_v56  ;;  %v1178_v2 = vmul.f32 %v922_v57, %v2632_v40  ;;  %v924_v3 = vadd.f32 1.0, %v1869_v29  ;;  %1890 = vtanh.f32 %v2710_v48  ;;  %v2782_v51 = vmul.f32 0.5, %v179_v37  ;;  %v183_v57 = vld [vmem:[%s2568_s30 + $0x168] sm:$0xff] }
  0x59   : > { %v1873_v36 = vpop.eup %1872  ;;  %1433 = vst [vmem:[%s2645_s17 + $0x78] sm:$0xff] %v1177_v61  ;;  %v1179_v7 = vmul.f32 %v923_v62, %v2636_v45  ;;  %v925_v8 = vadd.f32 1.0, %v1871_v32  ;;  %1892 = vtanh.f32 %v2716_v53  ;;  %v2788_v56 = vmul.f32 0.5, %v180_v42  ;;  %v184_v62 = vld [vmem:[%s2568_s30 + $0x170] sm:$0xff] }
  0x5a   : > { %v1875_v40 = vpop.eup %1874  ;;  %1434 = vst [vmem:[%s2645_s17 + $0x80] sm:$0xff] %v1178_v2  ;;  %v1180_v12 = vmul.f32 %v924_v3, %v2640_v50  ;;  %v926_v13 = vadd.f32 1.0, %v1873_v36  ;;  %1894 = vtanh.f32 %v2722_v58  ;;  %v2794_v61 = vmul.f32 0.5, %v181_v47  ;;  %v185_v3 = vld [vmem:[%s2568_s30 + $0x178] sm:$0xff] }
  0x5b   : > { %v1877_v45 = vpop.eup %1876  ;;  %1435 = vst [vmem:[%s2645_s17 + $0x88] sm:$0xff] %v1179_v7  ;;  %v1181_v20 = vmul.f32 %v925_v8, %v2650_v55  ;;  %v927_v15 = vadd.f32 1.0, %v1875_v40  ;;  %1896 = vtanh.f32 %v2728_v63  ;;  %v2800_v2 = vmul.f32 0.5, %v182_v52  ;;  %v186_v8 = vld [vmem:[%s2568_s30 + $0x180] sm:$0xff] }
  0x5c   : > { %v1879_v50 = vpop.eup %1878  ;;  %1436 = vst [vmem:[%s2645_s17 + $0x90] sm:$0xff] %v1180_v12  ;;  %v1182_v28 = vmul.f32 %v926_v13, %v2656_v60  ;;  %v928_v17 = vadd.f32 1.0, %v1877_v45  ;;  %1898 = vtanh.f32 %v2734_v4  ;;  %v2806_v7 = vmul.f32 0.5, %v183_v57  ;;  %v187_v13 = vld [vmem:[%s2568_s30 + $0x188] sm:$0xff] }
  0x5d   : > { %v1881_v55 = vpop.eup %1880  ;;  %1437 = vst [vmem:[%s2645_s17 + $0x98] sm:$0xff] %v1181_v20  ;;  %v1183_v34 = vmul.f32 %v927_v15, %v2662_v1  ;;  %v929_v19 = vadd.f32 1.0, %v1879_v50  ;;  %1900 = vtanh.f32 %v2740_v9  ;;  %v2812_v12 = vmul.f32 0.5, %v184_v62  ;;  %v188_v15 = vld [vmem:[%s2568_s30 + $0x190] sm:$0xff] }
  0x5e   : > { %v1883_v60 = vpop.eup %1882  ;;  %1438 = vst [vmem:[%s2645_s17 + $0xa0] sm:$0xff] %v1182_v28  ;;  %v1184_v39 = vmul.f32 %v928_v17, %v2668_v6  ;;  %v930_v21 = vadd.f32 1.0, %v1881_v55  ;;  %1902 = vtanh.f32 %v2746_v14  ;;  %v2818_v20 = vmul.f32 0.5, %v185_v3  ;;  %v189_v17 = vld [vmem:[%s2568_s30 + $0x198] sm:$0xff] }
  0x5f   : > { %v1885_v1 = vpop.eup %1884  ;;  %1439 = vst [vmem:[%s2645_s17 + $0xa8] sm:$0xff] %v1183_v34  ;;  %v1185_v44 = vmul.f32 %v929_v19, %v2674_v11  ;;  %v931_v23 = vadd.f32 1.0, %v1883_v60  ;;  %1904 = vtanh.f32 %v2752_v22  ;;  %v2824_v28 = vmul.f32 0.5, %v186_v8  ;;  %v190_v19 = vld [vmem:[%s2568_s30 + $0x1a0] sm:$0xff] }
  0x60   : > { %v1887_v6 = vpop.eup %1886  ;;  %1440 = vst [vmem:[%s2645_s17 + $0xb0] sm:$0xff] %v1184_v39  ;;  %v1186_v49 = vmul.f32 %v930_v21, %v2680_v18  ;;  %v932_v25 = vadd.f32 1.0, %v1885_v1  ;;  %1906 = vtanh.f32 %v2758_v30  ;;  %v2830_v34 = vmul.f32 0.5, %v187_v13  ;;  %v191_v21 = vld [vmem:[%s2568_s30 + $0x1a8] sm:$0xff] }
  0x61   : > { %v1889_v11 = vpop.eup %1888  ;;  %1441 = vst [vmem:[%s2645_s17 + $0xb8] sm:$0xff] %v1185_v44  ;;  %v1187_v54 = vmul.f32 %v931_v23, %v2686_v26  ;;  %v933_v27 = vadd.f32 1.0, %v1887_v6  ;;  %1908 = vtanh.f32 %v2764_v35  ;;  %v2836_v39 = vmul.f32 0.5, %v188_v15  ;;  %v192_v23 = vld [vmem:[%s2568_s30 + $0x1b0] sm:$0xff] }
  0x62   : > { %v1891_v18 = vpop.eup %1890  ;;  %1442 = vst [vmem:[%s2645_s17 + $0xc0] sm:$0xff] %v1186_v49  ;;  %v1188_v59 = vmul.f32 %v932_v25, %v2692_v33  ;;  %v934_v29 = vadd.f32 1.0, %v1889_v11  ;;  %1910 = vtanh.f32 %v2770_v41  ;;  %v2842_v44 = vmul.f32 0.5, %v189_v17  ;;  %v193_v25 = vld [vmem:[%s2568_s30 + $0x1b8] sm:$0xff] }
  0x63   : > { %v1893_v26 = vpop.eup %1892  ;;  %1443 = vst [vmem:[%s2645_s17 + $0xc8] sm:$0xff] %v1187_v54  ;;  %v1189_v0 = vmul.f32 %v933_v27, %v2698_v38  ;;  %v935_v32 = vadd.f32 1.0, %v1891_v18  ;;  %1912 = vtanh.f32 %v2776_v46  ;;  %v2848_v49 = vmul.f32 0.5, %v190_v19  ;;  %v194_v27 = vld [vmem:[%s2568_s30 + $0x1c0] sm:$0xff] }
  0x64   : > { %v1895_v33 = vpop.eup %1894  ;;  %1444 = vst [vmem:[%s2645_s17 + $0xd0] sm:$0xff] %v1188_v59  ;;  %v1190_v5 = vmul.f32 %v934_v29, %v2704_v43  ;;  %v936_v36 = vadd.f32 1.0, %v1893_v26  ;;  %1914 = vtanh.f32 %v2782_v51  ;;  %v2854_v54 = vmul.f32 0.5, %v191_v21  ;;  %v195_v29 = vld [vmem:[%s2568_s30 + $0x1c8] sm:$0xff] }
  0x65   : > { %v1897_v38 = vpop.eup %1896  ;;  %1445 = vst [vmem:[%s2645_s17 + $0xd8] sm:$0xff] %v1189_v0  ;;  %v1191_v10 = vmul.f32 %v935_v32, %v2710_v48  ;;  %v937_v40 = vadd.f32 1.0, %v1895_v33  ;;  %1916 = vtanh.f32 %v2788_v56  ;;  %v2860_v59 = vmul.f32 0.5, %v192_v23  ;;  %v196_v32 = vld [vmem:[%s2568_s30 + $0x1d0] sm:$0xff] }
  0x66   : > { %v1899_v43 = vpop.eup %1898  ;;  %1446 = vst [vmem:[%s2645_s17 + $0xe0] sm:$0xff] %v1190_v5  ;;  %v1192_v16 = vmul.f32 %v936_v36, %v2716_v53  ;;  %v938_v45 = vadd.f32 1.0, %v1897_v38  ;;  %1918 = vtanh.f32 %v2794_v61  ;;  %v2866_v0 = vmul.f32 0.5, %v193_v25  ;;  %v197_v36 = vld [vmem:[%s2568_s30 + $0x1d8] sm:$0xff] }
  0x67   : > { %v1901_v48 = vpop.eup %1900  ;;  %1447 = vst [vmem:[%s2645_s17 + $0xe8] sm:$0xff] %v1191_v10  ;;  %v1193_v24 = vmul.f32 %v937_v40, %v2722_v58  ;;  %v939_v50 = vadd.f32 1.0, %v1899_v43  ;;  %1920 = vtanh.f32 %v2800_v2  ;;  %v2872_v5 = vmul.f32 0.5, %v194_v27  ;;  %v198_v40 = vld [vmem:[%s2568_s30 + $0x1e0] sm:$0xff] }
  0x68   : > { %v1903_v53 = vpop.eup %1902  ;;  %1448 = vst [vmem:[%s2645_s17 + $0xf0] sm:$0xff] %v1192_v16  ;;  %v1194_v31 = vmul.f32 %v938_v45, %v2728_v63  ;;  %v940_v55 = vadd.f32 1.0, %v1901_v48  ;;  %1922 = vtanh.f32 %v2806_v7  ;;  %v2878_v10 = vmul.f32 0.5, %v195_v29  ;;  %v199_v45 = vld [vmem:[%s2568_s30 + $0x1e8] sm:$0xff] }
  0x69   : > { %v1905_v58 = vpop.eup %1904  ;;  %1449 = vst [vmem:[%s2645_s17 + $0xf8] sm:$0xff] %v1193_v24  ;;  %v1195_v37 = vmul.f32 %v939_v50, %v2734_v4  ;;  %v941_v60 = vadd.f32 1.0, %v1903_v53  ;;  %1924 = vtanh.f32 %v2812_v12  ;;  %v2884_v16 = vmul.f32 0.5, %v196_v32  ;;  %v200_v50 = vld [vmem:[%s2568_s30 + $0x1f0] sm:$0xff] }
  0x6a   : > { %v1907_v63 = vpop.eup %1906  ;;  %1450 = vst [vmem:[%s2645_s17 + $0x100] sm:$0xff] %v1194_v31  ;;  %v1196_v42 = vmul.f32 %v940_v55, %v2740_v9  ;;  %v942_v1 = vadd.f32 1.0, %v1905_v58  ;;  %1926 = vtanh.f32 %v2818_v20  ;;  %v2890_v24 = vmul.f32 0.5, %v197_v36  ;;  %v201_v55 = vld [vmem:[%s2568_s30 + $0x1f8] sm:$0xff] }
  0x6b   : > { %v1909_v4 = vpop.eup %1908  ;;  %1451 = vst [vmem:[%s2645_s17 + $0x108] sm:$0xff] %v1195_v37  ;;  %v1197_v47 = vmul.f32 %v941_v60, %v2746_v14  ;;  %v943_v6 = vadd.f32 1.0, %v1907_v63  ;;  %1928 = vtanh.f32 %v2824_v28  ;;  %v2896_v31 = vmul.f32 0.5, %v198_v40  ;;  %v202_v60 = vld [vmem:[%s2568_s30 + $0x200] sm:$0xff] }
  0x6c   : > { %v1911_v9 = vpop.eup %1910  ;;  %1452 = vst [vmem:[%s2645_s17 + $0x110] sm:$0xff] %v1196_v42  ;;  %v1198_v52 = vmul.f32 %v942_v1, %v2752_v22  ;;  %v944_v11 = vadd.f32 1.0, %v1909_v4  ;;  %1930 = vtanh.f32 %v2830_v34  ;;  %v2902_v37 = vmul.f32 0.5, %v199_v45  ;;  %v203_v1 = vld [vmem:[%s2568_s30 + $0x208] sm:$0xff] }
  0x6d   : > { %v1913_v14 = vpop.eup %1912  ;;  %1453 = vst [vmem:[%s2645_s17 + $0x118] sm:$0xff] %v1197_v47  ;;  %v1199_v57 = vmul.f32 %v943_v6, %v2758_v30  ;;  %v945_v18 = vadd.f32 1.0, %v1911_v9  ;;  %1932 = vtanh.f32 %v2836_v39  ;;  %v2908_v42 = vmul.f32 0.5, %v200_v50  ;;  %v204_v6 = vld [vmem:[%s2568_s30 + $0x210] sm:$0xff] }
  0x6e   : > { %v1915_v22 = vpop.eup %1914  ;;  %1454 = vst [vmem:[%s2645_s17 + $0x120] sm:$0xff] %v1198_v52  ;;  %v1200_v62 = vmul.f32 %v944_v11, %v2764_v35  ;;  %v946_v26 = vadd.f32 1.0, %v1913_v14  ;;  %1934 = vtanh.f32 %v2842_v44  ;;  %v2914_v47 = vmul.f32 0.5, %v201_v55  ;;  %v205_v11 = vld [vmem:[%s2568_s30 + $0x218] sm:$0xff] }
  0x6f   : > { %v1917_v30 = vpop.eup %1916  ;;  %1455 = vst [vmem:[%s2645_s17 + $0x128] sm:$0xff] %v1199_v57  ;;  %v1201_v3 = vmul.f32 %v945_v18, %v2770_v41  ;;  %v947_v33 = vadd.f32 1.0, %v1915_v22  ;;  %1936 = vtanh.f32 %v2848_v49  ;;  %v2920_v52 = vmul.f32 0.5, %v202_v60  ;;  %v206_v18 = vld [vmem:[%s2568_s30 + $0x220] sm:$0xff] }
  0x70   : > { %v1919_v35 = vpop.eup %1918  ;;  %1456 = vst [vmem:[%s2645_s17 + $0x130] sm:$0xff] %v1200_v62  ;;  %v1202_v8 = vmul.f32 %v946_v26, %v2776_v46  ;;  %v948_v38 = vadd.f32 1.0, %v1917_v30  ;;  %1938 = vtanh.f32 %v2854_v54  ;;  %v2926_v57 = vmul.f32 0.5, %v203_v1  ;;  %v207_v26 = vld [vmem:[%s2568_s30 + $0x228] sm:$0xff] }
  0x71   : > { %v1921_v41 = vpop.eup %1920  ;;  %1457 = vst [vmem:[%s2645_s17 + $0x138] sm:$0xff] %v1201_v3  ;;  %v1203_v13 = vmul.f32 %v947_v33, %v2782_v51  ;;  %v949_v43 = vadd.f32 1.0, %v1919_v35  ;;  %1940 = vtanh.f32 %v2860_v59  ;;  %v2932_v62 = vmul.f32 0.5, %v204_v6  ;;  %v208_v33 = vld [vmem:[%s2568_s30 + $0x230] sm:$0xff] }
  0x72   : > { %v1923_v46 = vpop.eup %1922  ;;  %1458 = vst [vmem:[%s2645_s17 + $0x140] sm:$0xff] %v1202_v8  ;;  %v1204_v15 = vmul.f32 %v948_v38, %v2788_v56  ;;  %v950_v48 = vadd.f32 1.0, %v1921_v41  ;;  %1942 = vtanh.f32 %v2866_v0  ;;  %v2938_v3 = vmul.f32 0.5, %v205_v11  ;;  %v209_v38 = vld [vmem:[%s2568_s30 + $0x238] sm:$0xff] }
  0x73   : > { %v1925_v51 = vpop.eup %1924  ;;  %1459 = vst [vmem:[%s2645_s17 + $0x148] sm:$0xff] %v1203_v13  ;;  %v1205_v17 = vmul.f32 %v949_v43, %v2794_v61  ;;  %v951_v53 = vadd.f32 1.0, %v1923_v46  ;;  %1944 = vtanh.f32 %v2872_v5  ;;  %v2944_v8 = vmul.f32 0.5, %v206_v18  ;;  %v210_v43 = vld [vmem:[%s2568_s30 + $0x240] sm:$0xff] }
  0x74   : > { %v1927_v56 = vpop.eup %1926  ;;  %1460 = vst [vmem:[%s2645_s17 + $0x150] sm:$0xff] %v1204_v15  ;;  %v1206_v19 = vmul.f32 %v950_v48, %v2800_v2  ;;  %v952_v58 = vadd.f32 1.0, %v1925_v51  ;;  %1946 = vtanh.f32 %v2878_v10  ;;  %v2950_v13 = vmul.f32 0.5, %v207_v26  ;;  %v211_v48 = vld [vmem:[%s2568_s30 + $0x248] sm:$0xff] }
  0x75   : > { %v1929_v61 = vpop.eup %1928  ;;  %1461 = vst [vmem:[%s2645_s17 + $0x158] sm:$0xff] %v1205_v17  ;;  %v1207_v21 = vmul.f32 %v951_v53, %v2806_v7  ;;  %v953_v63 = vadd.f32 1.0, %v1927_v56  ;;  %1948 = vtanh.f32 %v2884_v16  ;;  %v2956_v15 = vmul.f32 0.5, %v208_v33  ;;  %v212_v53 = vld [vmem:[%s2568_s30 + $0x250] sm:$0xff] }
  0x76   : > { %v1931_v2 = vpop.eup %1930  ;;  %1462 = vst [vmem:[%s2645_s17 + $0x160] sm:$0xff] %v1206_v19  ;;  %v1208_v23 = vmul.f32 %v952_v58, %v2812_v12  ;;  %v954_v4 = vadd.f32 1.0, %v1929_v61  ;;  %1950 = vtanh.f32 %v2890_v24  ;;  %v2962_v17 = vmul.f32 0.5, %v209_v38  ;;  %v213_v58 = vld [vmem:[%s2568_s30 + $0x258] sm:$0xff] }
  0x77   : > { %v1933_v7 = vpop.eup %1932  ;;  %1463 = vst [vmem:[%s2645_s17 + $0x168] sm:$0xff] %v1207_v21  ;;  %v1209_v25 = vmul.f32 %v953_v63, %v2818_v20  ;;  %v955_v9 = vadd.f32 1.0, %v1931_v2  ;;  %1952 = vtanh.f32 %v2896_v31  ;;  %v2968_v19 = vmul.f32 0.5, %v210_v43  ;;  %v214_v63 = vld [vmem:[%s2568_s30 + $0x260] sm:$0xff] }
  0x78   : > { %v1935_v12 = vpop.eup %1934  ;;  %1464 = vst [vmem:[%s2645_s17 + $0x170] sm:$0xff] %v1208_v23  ;;  %v1210_v27 = vmul.f32 %v954_v4, %v2824_v28  ;;  %v956_v14 = vadd.f32 1.0, %v1933_v7  ;;  %1954 = vtanh.f32 %v2902_v37  ;;  %v2974_v21 = vmul.f32 0.5, %v211_v48  ;;  %v215_v4 = vld [vmem:[%s2568_s30 + $0x268] sm:$0xff] }
  0x79   : > { %v1937_v20 = vpop.eup %1936  ;;  %1465 = vst [vmem:[%s2645_s17 + $0x178] sm:$0xff] %v1209_v25  ;;  %v1211_v29 = vmul.f32 %v955_v9, %v2830_v34  ;;  %v957_v22 = vadd.f32 1.0, %v1935_v12  ;;  %1956 = vtanh.f32 %v2908_v42  ;;  %v2980_v23 = vmul.f32 0.5, %v212_v53  ;;  %v216_v9 = vld [vmem:[%s2568_s30 + $0x270] sm:$0xff] }
  0x7a   : > { %v1939_v28 = vpop.eup %1938  ;;  %1466 = vst [vmem:[%s2645_s17 + $0x180] sm:$0xff] %v1210_v27  ;;  %v1212_v32 = vmul.f32 %v956_v14, %v2836_v39  ;;  %v958_v30 = vadd.f32 1.0, %v1937_v20  ;;  %1958 = vtanh.f32 %v2914_v47  ;;  %v2986_v25 = vmul.f32 0.5, %v213_v58  ;;  %v217_v14 = vld [vmem:[%s2568_s30 + $0x278] sm:$0xff] }
  0x7b   : > { %v1941_v34 = vpop.eup %1940  ;;  %1467 = vst [vmem:[%s2645_s17 + $0x188] sm:$0xff] %v1211_v29  ;;  %v1213_v36 = vmul.f32 %v957_v22, %v2842_v44  ;;  %v959_v35 = vadd.f32 1.0, %v1939_v28  ;;  %1960 = vtanh.f32 %v2920_v52  ;;  %v2992_v27 = vmul.f32 0.5, %v214_v63  ;;  %v218_v22 = vld [vmem:[%s2568_s30 + $0x280] sm:$0xff] }
  0x7c   : > { %v1943_v39 = vpop.eup %1942  ;;  %1468 = vst [vmem:[%s2645_s17 + $0x190] sm:$0xff] %v1212_v32  ;;  %v1214_v40 = vmul.f32 %v958_v30, %v2848_v49  ;;  %v960_v41 = vadd.f32 1.0, %v1941_v34  ;;  %1962 = vtanh.f32 %v2926_v57  ;;  %v2998_v29 = vmul.f32 0.5, %v215_v4  ;;  %v219_v30 = vld [vmem:[%s2568_s30 + $0x288] sm:$0xff] }
  0x7d   : > { %v1945_v44 = vpop.eup %1944  ;;  %1469 = vst [vmem:[%s2645_s17 + $0x198] sm:$0xff] %v1213_v36  ;;  %v1215_v45 = vmul.f32 %v959_v35, %v2854_v54  ;;  %v961_v46 = vadd.f32 1.0, %v1943_v39  ;;  %1964 = vtanh.f32 %v2932_v62  ;;  %v3004_v32 = vmul.f32 0.5, %v216_v9  ;;  %v220_v35 = vld [vmem:[%s2568_s30 + $0x290] sm:$0xff] }
  0x7e   : > { %v1947_v49 = vpop.eup %1946  ;;  %1470 = vst [vmem:[%s2645_s17 + $0x1a0] sm:$0xff] %v1214_v40  ;;  %v1216_v50 = vmul.f32 %v960_v41, %v2860_v59  ;;  %v962_v51 = vadd.f32 1.0, %v1945_v44  ;;  %1966 = vtanh.f32 %v2938_v3  ;;  %v3010_v36 = vmul.f32 0.5, %v217_v14  ;;  %v221_v41 = vld [vmem:[%s2568_s30 + $0x298] sm:$0xff] }
  0x7f   : > { %v1949_v54 = vpop.eup %1948  ;;  %1471 = vst [vmem:[%s2645_s17 + $0x1a8] sm:$0xff] %v1215_v45  ;;  %v1217_v55 = vmul.f32 %v961_v46, %v2866_v0  ;;  %v963_v56 = vadd.f32 1.0, %v1947_v49  ;;  %1968 = vtanh.f32 %v2944_v8  ;;  %v3016_v40 = vmul.f32 0.5, %v218_v22  ;;  %v222_v46 = vld [vmem:[%s2568_s30 + $0x2a0] sm:$0xff] }
  0x80   : > { %v1951_v59 = vpop.eup %1950  ;;  %1472 = vst [vmem:[%s2645_s17 + $0x1b0] sm:$0xff] %v1216_v50  ;;  %v1218_v60 = vmul.f32 %v962_v51, %v2872_v5  ;;  %v964_v61 = vadd.f32 1.0, %v1949_v54  ;;  %1970 = vtanh.f32 %v2950_v13  ;;  %v3022_v45 = vmul.f32 0.5, %v219_v30  ;;  %v223_v51 = vld [vmem:[%s2568_s30 + $0x2a8] sm:$0xff] }
  0x81   : > { %v1953_v0 = vpop.eup %1952  ;;  %1473 = vst [vmem:[%s2645_s17 + $0x1b8] sm:$0xff] %v1217_v55  ;;  %v1219_v1 = vmul.f32 %v963_v56, %v2878_v10  ;;  %v965_v2 = vadd.f32 1.0, %v1951_v59  ;;  %1972 = vtanh.f32 %v2956_v15  ;;  %v3028_v50 = vmul.f32 0.5, %v220_v35  ;;  %v224_v56 = vld [vmem:[%s2568_s30 + $0x2b0] sm:$0xff] }
  0x82   : > { %v1955_v5 = vpop.eup %1954  ;;  %1474 = vst [vmem:[%s2645_s17 + $0x1c0] sm:$0xff] %v1218_v60  ;;  %v1220_v6 = vmul.f32 %v964_v61, %v2884_v16  ;;  %v966_v7 = vadd.f32 1.0, %v1953_v0  ;;  %1974 = vtanh.f32 %v2962_v17  ;;  %v3034_v55 = vmul.f32 0.5, %v221_v41  ;;  %v225_v61 = vld [vmem:[%s2568_s30 + $0x2b8] sm:$0xff] }
  0x83   : > { %v1957_v10 = vpop.eup %1956  ;;  %1475 = vst [vmem:[%s2645_s17 + $0x1c8] sm:$0xff] %v1219_v1  ;;  %v1221_v11 = vmul.f32 %v965_v2, %v2890_v24  ;;  %v967_v12 = vadd.f32 1.0, %v1955_v5  ;;  %1976 = vtanh.f32 %v2968_v19  ;;  %v3040_v60 = vmul.f32 0.5, %v222_v46  ;;  %v226_v2 = vld [vmem:[%s2568_s30 + $0x2c0] sm:$0xff] }
  0x84   : > { %v1959_v16 = vpop.eup %1958  ;;  %1476 = vst [vmem:[%s2645_s17 + $0x1d0] sm:$0xff] %v1220_v6  ;;  %v1222_v18 = vmul.f32 %v966_v7, %v2896_v31  ;;  %v968_v20 = vadd.f32 1.0, %v1957_v10  ;;  %1978 = vtanh.f32 %v2974_v21  ;;  %v3046_v1 = vmul.f32 0.5, %v223_v51  ;;  %v227_v7 = vld [vmem:[%s2568_s30 + $0x2c8] sm:$0xff] }
  0x85   : > { %v1961_v24 = vpop.eup %1960  ;;  %1477 = vst [vmem:[%s2645_s17 + $0x1d8] sm:$0xff] %v1221_v11  ;;  %v1223_v26 = vmul.f32 %v967_v12, %v2902_v37  ;;  %v969_v28 = vadd.f32 1.0, %v1959_v16  ;;  %1980 = vtanh.f32 %v2980_v23  ;;  %v3052_v6 = vmul.f32 0.5, %v224_v56  ;;  %v228_v12 = vld [vmem:[%s2568_s30 + $0x2d0] sm:$0xff] }
  0x86   : > { %v1963_v31 = vpop.eup %1962  ;;  %1478 = vst [vmem:[%s2645_s17 + $0x1e0] sm:$0xff] %v1222_v18  ;;  %v1224_v33 = vmul.f32 %v968_v20, %v2908_v42  ;;  %v970_v34 = vadd.f32 1.0, %v1961_v24  ;;  %1982 = vtanh.f32 %v2986_v25  ;;  %v3058_v11 = vmul.f32 0.5, %v225_v61  ;;  %v229_v20 = vld [vmem:[%s2568_s30 + $0x2d8] sm:$0xff] }
  0x87   : > { %v1965_v37 = vpop.eup %1964  ;;  %1479 = vst [vmem:[%s2645_s17 + $0x1e8] sm:$0xff] %v1223_v26  ;;  %v1225_v38 = vmul.f32 %v969_v28, %v2914_v47  ;;  %v971_v39 = vadd.f32 1.0, %v1963_v31  ;;  %1984 = vtanh.f32 %v2992_v27  ;;  %v3064_v18 = vmul.f32 0.5, %v226_v2  ;;  %v230_v28 = vld [vmem:[%s2568_s30 + $0x2e0] sm:$0xff] }
  0x88   : > { %v1967_v42 = vpop.eup %1966  ;;  %1480 = vst [vmem:[%s2645_s17 + $0x1f0] sm:$0xff] %v1224_v33  ;;  %v1226_v43 = vmul.f32 %v970_v34, %v2920_v52  ;;  %v972_v44 = vadd.f32 1.0, %v1965_v37  ;;  %1986 = vtanh.f32 %v2998_v29  ;;  %v3070_v26 = vmul.f32 0.5, %v227_v7  ;;  %v231_v34 = vld [vmem:[%s2568_s30 + $0x2e8] sm:$0xff] }
  0x89   : > { %v1969_v47 = vpop.eup %1968  ;;  %1481 = vst [vmem:[%s2645_s17 + $0x1f8] sm:$0xff] %v1225_v38  ;;  %v1227_v48 = vmul.f32 %v971_v39, %v2926_v57  ;;  %v973_v49 = vadd.f32 1.0, %v1967_v42  ;;  %1988 = vtanh.f32 %v3004_v32  ;;  %v3076_v33 = vmul.f32 0.5, %v228_v12  ;;  %v232_v39 = vld [vmem:[%s2568_s30 + $0x2f0] sm:$0xff] }
  0x8a   : > { %v1971_v52 = vpop.eup %1970  ;;  %1482 = vst [vmem:[%s2645_s17 + $0x200] sm:$0xff] %v1226_v43  ;;  %v1228_v53 = vmul.f32 %v972_v44, %v2932_v62  ;;  %v974_v54 = vadd.f32 1.0, %v1969_v47  ;;  %1990 = vtanh.f32 %v3010_v36  ;;  %v3082_v38 = vmul.f32 0.5, %v229_v20  ;;  %v233_v44 = vld [vmem:[%s2568_s30 + $0x2f8] sm:$0xff] }
  0x8b   : > { %v1973_v57 = vpop.eup %1972  ;;  %1483 = vst [vmem:[%s2645_s17 + $0x208] sm:$0xff] %v1227_v48  ;;  %v1229_v58 = vmul.f32 %v973_v49, %v2938_v3  ;;  %v975_v59 = vadd.f32 1.0, %v1971_v52  ;;  %1992 = vtanh.f32 %v3016_v40  ;;  %v3088_v43 = vmul.f32 0.5, %v230_v28  ;;  %v234_v49 = vld [vmem:[%s2568_s30 + $0x300] sm:$0xff] }
  0x8c   : > { %v1975_v62 = vpop.eup %1974  ;;  %1484 = vst [vmem:[%s2645_s17 + $0x210] sm:$0xff] %v1228_v53  ;;  %v1230_v63 = vmul.f32 %v974_v54, %v2944_v8  ;;  %v976_v0 = vadd.f32 1.0, %v1973_v57  ;;  %1994 = vtanh.f32 %v3022_v45  ;;  %v3094_v48 = vmul.f32 0.5, %v231_v34  ;;  %v235_v54 = vld [vmem:[%s2568_s30 + $0x308] sm:$0xff] }
  0x8d   : > { %v1977_v3 = vpop.eup %1976  ;;  %1485 = vst [vmem:[%s2645_s17 + $0x218] sm:$0xff] %v1229_v58  ;;  %v1231_v4 = vmul.f32 %v975_v59, %v2950_v13  ;;  %v977_v5 = vadd.f32 1.0, %v1975_v62  ;;  %1996 = vtanh.f32 %v3028_v50  ;;  %v3100_v53 = vmul.f32 0.5, %v232_v39  ;;  %v236_v59 = vld [vmem:[%s2568_s30 + $0x310] sm:$0xff] }
  0x8e   : > { %v1979_v8 = vpop.eup %1978  ;;  %1486 = vst [vmem:[%s2645_s17 + $0x220] sm:$0xff] %v1230_v63  ;;  %v1232_v9 = vmul.f32 %v976_v0, %v2956_v15  ;;  %v978_v10 = vadd.f32 1.0, %v1977_v3  ;;  %1998 = vtanh.f32 %v3034_v55  ;;  %v3106_v58 = vmul.f32 0.5, %v233_v44  ;;  %v237_v0 = vld [vmem:[%s2568_s30 + $0x318] sm:$0xff] }
  0x8f   : > { %v1981_v13 = vpop.eup %1980  ;;  %1487 = vst [vmem:[%s2645_s17 + $0x228] sm:$0xff] %v1231_v4  ;;  %v1233_v14 = vmul.f32 %v977_v5, %v2962_v17  ;;  %v979_v16 = vadd.f32 1.0, %v1979_v8  ;;  %2000 = vtanh.f32 %v3040_v60  ;;  %v3112_v63 = vmul.f32 0.5, %v234_v49  ;;  %v238_v5 = vld [vmem:[%s2568_s30 + $0x320] sm:$0xff] }
  0x90   : > { %v1983_v15 = vpop.eup %1982  ;;  %1488 = vst [vmem:[%s2645_s17 + $0x230] sm:$0xff] %v1232_v9  ;;  %v1234_v22 = vmul.f32 %v978_v10, %v2968_v19  ;;  %v980_v24 = vadd.f32 1.0, %v1981_v13  ;;  %2002 = vtanh.f32 %v3046_v1  ;;  %v3118_v4 = vmul.f32 0.5, %v235_v54  ;;  %v239_v10 = vld [vmem:[%s2568_s30 + $0x328] sm:$0xff] }
  0x91   : > { %v1985_v17 = vpop.eup %1984  ;;  %1489 = vst [vmem:[%s2645_s17 + $0x238] sm:$0xff] %v1233_v14  ;;  %v1235_v30 = vmul.f32 %v979_v16, %v2974_v21  ;;  %v981_v31 = vadd.f32 1.0, %v1983_v15  ;;  %2004 = vtanh.f32 %v3052_v6  ;;  %v3124_v9 = vmul.f32 0.5, %v236_v59  ;;  %v240_v16 = vld [vmem:[%s2568_s30 + $0x330] sm:$0xff] }
  0x92   : > { %v1987_v19 = vpop.eup %1986  ;;  %1490 = vst [vmem:[%s2645_s17 + $0x240] sm:$0xff] %v1234_v22  ;;  %v1236_v35 = vmul.f32 %v980_v24, %v2980_v23  ;;  %v982_v37 = vadd.f32 1.0, %v1985_v17  ;;  %2006 = vtanh.f32 %v3058_v11  ;;  %v3130_v14 = vmul.f32 0.5, %v237_v0  ;;  %v241_v24 = vld [vmem:[%s2568_s30 + $0x338] sm:$0xff] }
  0x93   : > { %v1989_v21 = vpop.eup %1988  ;;  %1491 = vst [vmem:[%s2645_s17 + $0x248] sm:$0xff] %v1235_v30  ;;  %v1237_v41 = vmul.f32 %v981_v31, %v2986_v25  ;;  %v983_v42 = vadd.f32 1.0, %v1987_v19  ;;  %2008 = vtanh.f32 %v3064_v18  ;;  %v3136_v22 = vmul.f32 0.5, %v238_v5  ;;  %v242_v31 = vld [vmem:[%s2568_s30 + $0x340] sm:$0xff] }
  0x94   : > { %v1991_v23 = vpop.eup %1990  ;;  %1492 = vst [vmem:[%s2645_s17 + $0x250] sm:$0xff] %v1236_v35  ;;  %v1238_v46 = vmul.f32 %v982_v37, %v2992_v27  ;;  %v984_v47 = vadd.f32 1.0, %v1989_v21  ;;  %2010 = vtanh.f32 %v3070_v26  ;;  %v3142_v30 = vmul.f32 0.5, %v239_v10  ;;  %v243_v37 = vld [vmem:[%s2568_s30 + $0x348] sm:$0xff] }
  0x95   : > { %v1993_v25 = vpop.eup %1992  ;;  %1493 = vst [vmem:[%s2645_s17 + $0x258] sm:$0xff] %v1237_v41  ;;  %v1239_v51 = vmul.f32 %v983_v42, %v2998_v29  ;;  %v985_v52 = vadd.f32 1.0, %v1991_v23  ;;  %2012 = vtanh.f32 %v3076_v33  ;;  %v3148_v35 = vmul.f32 0.5, %v240_v16  ;;  %v244_v42 = vld [vmem:[%s2568_s30 + $0x350] sm:$0xff] }
  0x96   : > { %v1995_v27 = vpop.eup %1994  ;;  %1494 = vst [vmem:[%s2645_s17 + $0x260] sm:$0xff] %v1238_v46  ;;  %v1240_v56 = vmul.f32 %v984_v47, %v3004_v32  ;;  %v986_v57 = vadd.f32 1.0, %v1993_v25  ;;  %2014 = vtanh.f32 %v3082_v38  ;;  %v3154_v41 = vmul.f32 0.5, %v241_v24  ;;  %v245_v47 = vld [vmem:[%s2568_s30 + $0x358] sm:$0xff] }
  0x97   : > { %v1997_v29 = vpop.eup %1996  ;;  %1495 = vst [vmem:[%s2645_s17 + $0x268] sm:$0xff] %v1239_v51  ;;  %v1241_v61 = vmul.f32 %v985_v52, %v3010_v36  ;;  %v987_v62 = vadd.f32 1.0, %v1995_v27  ;;  %2016 = vtanh.f32 %v3088_v43  ;;  %v3160_v46 = vmul.f32 0.5, %v242_v31  ;;  %v246_v52 = vld [vmem:[%s2568_s30 + $0x360] sm:$0xff] }
  0x98   : > { %v1999_v32 = vpop.eup %1998  ;;  %1496 = vst [vmem:[%s2645_s17 + $0x270] sm:$0xff] %v1240_v56  ;;  %v1242_v2 = vmul.f32 %v986_v57, %v3016_v40  ;;  %v988_v3 = vadd.f32 1.0, %v1997_v29  ;;  %2018 = vtanh.f32 %v3094_v48  ;;  %v3166_v51 = vmul.f32 0.5, %v243_v37  ;;  %v247_v57 = vld [vmem:[%s2568_s30 + $0x368] sm:$0xff] }
  0x99   : > { %v2001_v36 = vpop.eup %2000  ;;  %1497 = vst [vmem:[%s2645_s17 + $0x278] sm:$0xff] %v1241_v61  ;;  %v1243_v7 = vmul.f32 %v987_v62, %v3022_v45  ;;  %v989_v8 = vadd.f32 1.0, %v1999_v32  ;;  %2020 = vtanh.f32 %v3100_v53  ;;  %v3172_v56 = vmul.f32 0.5, %v244_v42  ;;  %v248_v62 = vld [vmem:[%s2568_s30 + $0x370] sm:$0xff] }
  0x9a   : > { %v2003_v40 = vpop.eup %2002  ;;  %1498 = vst [vmem:[%s2645_s17 + $0x280] sm:$0xff] %v1242_v2  ;;  %v1244_v12 = vmul.f32 %v988_v3, %v3028_v50  ;;  %v990_v13 = vadd.f32 1.0, %v2001_v36  ;;  %2022 = vtanh.f32 %v3106_v58  ;;  %v3178_v61 = vmul.f32 0.5, %v245_v47  ;;  %v249_v3 = vld [vmem:[%s2568_s30 + $0x378] sm:$0xff] }
  0x9b   : > { %v2005_v45 = vpop.eup %2004  ;;  %1499 = vst [vmem:[%s2645_s17 + $0x288] sm:$0xff] %v1243_v7  ;;  %v1245_v20 = vmul.f32 %v989_v8, %v3034_v55  ;;  %v991_v15 = vadd.f32 1.0, %v2003_v40  ;;  %2024 = vtanh.f32 %v3112_v63  ;;  %v3184_v2 = vmul.f32 0.5, %v246_v52  ;;  %v250_v8 = vld [vmem:[%s2568_s30 + $0x380] sm:$0xff] }
  0x9c   : > { %v2007_v50 = vpop.eup %2006  ;;  %1500 = vst [vmem:[%s2645_s17 + $0x290] sm:$0xff] %v1244_v12  ;;  %v1246_v28 = vmul.f32 %v990_v13, %v3040_v60  ;;  %v992_v17 = vadd.f32 1.0, %v2005_v45  ;;  %2026 = vtanh.f32 %v3118_v4  ;;  %v3190_v7 = vmul.f32 0.5, %v247_v57  ;;  %v251_v13 = vld [vmem:[%s2568_s30 + $0x388] sm:$0xff] }
  0x9d   : > { %v2009_v55 = vpop.eup %2008  ;;  %1501 = vst [vmem:[%s2645_s17 + $0x298] sm:$0xff] %v1245_v20  ;;  %v1247_v34 = vmul.f32 %v991_v15, %v3046_v1  ;;  %v993_v19 = vadd.f32 1.0, %v2007_v50  ;;  %2028 = vtanh.f32 %v3124_v9  ;;  %v3196_v12 = vmul.f32 0.5, %v248_v62  ;;  %v252_v15 = vld [vmem:[%s2568_s30 + $0x390] sm:$0xff] }
  0x9e   : > { %v2011_v60 = vpop.eup %2010  ;;  %1502 = vst [vmem:[%s2645_s17 + $0x2a0] sm:$0xff] %v1246_v28  ;;  %v1248_v39 = vmul.f32 %v992_v17, %v3052_v6  ;;  %v994_v21 = vadd.f32 1.0, %v2009_v55  ;;  %2030 = vtanh.f32 %v3130_v14  ;;  %v3202_v20 = vmul.f32 0.5, %v249_v3  ;;  %v253_v17 = vld [vmem:[%s2568_s30 + $0x398] sm:$0xff] }
  0x9f   : > { %v2013_v1 = vpop.eup %2012  ;;  %1503 = vst [vmem:[%s2645_s17 + $0x2a8] sm:$0xff] %v1247_v34  ;;  %v1249_v44 = vmul.f32 %v993_v19, %v3058_v11  ;;  %v995_v23 = vadd.f32 1.0, %v2011_v60  ;;  %2032 = vtanh.f32 %v3136_v22  ;;  %v3208_v28 = vmul.f32 0.5, %v250_v8  ;;  %v254_v19 = vld [vmem:[%s2568_s30 + $0x3a0] sm:$0xff] }
  0xa0   : > { %v2015_v6 = vpop.eup %2014  ;;  %1504 = vst [vmem:[%s2645_s17 + $0x2b0] sm:$0xff] %v1248_v39  ;;  %v1250_v49 = vmul.f32 %v994_v21, %v3064_v18  ;;  %v996_v25 = vadd.f32 1.0, %v2013_v1  ;;  %2034 = vtanh.f32 %v3142_v30  ;;  %v3214_v34 = vmul.f32 0.5, %v251_v13  ;;  %v255_v21 = vld [vmem:[%s2568_s30 + $0x3a8] sm:$0xff] }
  0xa1   : > { %v2017_v11 = vpop.eup %2016  ;;  %1505 = vst [vmem:[%s2645_s17 + $0x2b8] sm:$0xff] %v1249_v44  ;;  %v1251_v54 = vmul.f32 %v995_v23, %v3070_v26  ;;  %v997_v27 = vadd.f32 1.0, %v2015_v6  ;;  %2036 = vtanh.f32 %v3148_v35  ;;  %v3220_v39 = vmul.f32 0.5, %v252_v15  ;;  %v256_v23 = vld [vmem:[%s2568_s30 + $0x3b0] sm:$0xff] }
  0xa2   : > { %v2019_v18 = vpop.eup %2018  ;;  %1506 = vst [vmem:[%s2645_s17 + $0x2c0] sm:$0xff] %v1250_v49  ;;  %v1252_v59 = vmul.f32 %v996_v25, %v3076_v33  ;;  %v998_v29 = vadd.f32 1.0, %v2017_v11  ;;  %2038 = vtanh.f32 %v3154_v41  ;;  %v3226_v44 = vmul.f32 0.5, %v253_v17  ;;  %v257_v25 = vld [vmem:[%s2568_s30 + $0x3b8] sm:$0xff] }
  0xa3   : > { %v2021_v26 = vpop.eup %2020  ;;  %1507 = vst [vmem:[%s2645_s17 + $0x2c8] sm:$0xff] %v1251_v54  ;;  %v1253_v0 = vmul.f32 %v997_v27, %v3082_v38  ;;  %v999_v32 = vadd.f32 1.0, %v2019_v18  ;;  %2040 = vtanh.f32 %v3160_v46  ;;  %v3232_v49 = vmul.f32 0.5, %v254_v19  ;;  %v258_v27 = vld [vmem:[%s2568_s30 + $0x3c0] sm:$0xff] }
  0xa4   : > { %v2023_v33 = vpop.eup %2022  ;;  %1508 = vst [vmem:[%s2645_s17 + $0x2d0] sm:$0xff] %v1252_v59  ;;  %v1254_v5 = vmul.f32 %v998_v29, %v3088_v43  ;;  %v1000_v36 = vadd.f32 1.0, %v2021_v26  ;;  %2042 = vtanh.f32 %v3166_v51  ;;  %v3238_v54 = vmul.f32 0.5, %v255_v21  ;;  %v259_v29 = vld [vmem:[%s2568_s30 + $0x3c8] sm:$0xff] }
  0xa5   : > { %v2025_v38 = vpop.eup %2024  ;;  %1509 = vst [vmem:[%s2645_s17 + $0x2d8] sm:$0xff] %v1253_v0  ;;  %v1255_v10 = vmul.f32 %v999_v32, %v3094_v48  ;;  %v1001_v40 = vadd.f32 1.0, %v2023_v33  ;;  %2044 = vtanh.f32 %v3172_v56  ;;  %v3244_v59 = vmul.f32 0.5, %v256_v23  ;;  %v260_v32 = vld [vmem:[%s2568_s30 + $0x3d0] sm:$0xff] }
  0xa6   : > { %v2027_v43 = vpop.eup %2026  ;;  %1510 = vst [vmem:[%s2645_s17 + $0x2e0] sm:$0xff] %v1254_v5  ;;  %v1256_v16 = vmul.f32 %v1000_v36, %v3100_v53  ;;  %v1002_v45 = vadd.f32 1.0, %v2025_v38  ;;  %2046 = vtanh.f32 %v3178_v61  ;;  %v3250_v0 = vmul.f32 0.5, %v257_v25  ;;  %v261_v36 = vld [vmem:[%s2568_s30 + $0x3d8] sm:$0xff] }
  0xa7   : > { %v2029_v48 = vpop.eup %2028  ;;  %1511 = vst [vmem:[%s2645_s17 + $0x2e8] sm:$0xff] %v1255_v10  ;;  %v1257_v24 = vmul.f32 %v1001_v40, %v3106_v58  ;;  %v1003_v50 = vadd.f32 1.0, %v2027_v43  ;;  %2048 = vtanh.f32 %v3184_v2  ;;  %v3256_v5 = vmul.f32 0.5, %v258_v27  ;;  %v262_v40 = vld [vmem:[%s2568_s30 + $0x3e0] sm:$0xff] }
  0xa8   : > { %v2031_v53 = vpop.eup %2030  ;;  %1512 = vst [vmem:[%s2645_s17 + $0x2f0] sm:$0xff] %v1256_v16  ;;  %v1258_v31 = vmul.f32 %v1002_v45, %v3112_v63  ;;  %v1004_v55 = vadd.f32 1.0, %v2029_v48  ;;  %2050 = vtanh.f32 %v3190_v7  ;;  %v3262_v10 = vmul.f32 0.5, %v259_v29  ;;  %v263_v45 = vld [vmem:[%s2568_s30 + $0x3e8] sm:$0xff] }
  0xa9   : > { %v2033_v58 = vpop.eup %2032  ;;  %1513 = vst [vmem:[%s2645_s17 + $0x2f8] sm:$0xff] %v1257_v24  ;;  %v1259_v37 = vmul.f32 %v1003_v50, %v3118_v4  ;;  %v1005_v60 = vadd.f32 1.0, %v2031_v53  ;;  %2052 = vtanh.f32 %v3196_v12  ;;  %v3268_v16 = vmul.f32 0.5, %v260_v32  ;;  %v264_v50 = vld [vmem:[%s2568_s30 + $0x3f0] sm:$0xff] }
  0xaa   : > { %v2035_v63 = vpop.eup %2034  ;;  %1514 = vst [vmem:[%s2645_s17 + $0x300] sm:$0xff] %v1258_v31  ;;  %v1260_v42 = vmul.f32 %v1004_v55, %v3124_v9  ;;  %v1006_v1 = vadd.f32 1.0, %v2033_v58  ;;  %2054 = vtanh.f32 %v3202_v20  ;;  %v3274_v24 = vmul.f32 0.5, %v261_v36  ;;  %v265_v55 = vld [vmem:[%s2568_s30 + $0x3f8] sm:$0xff] }
  0xab   : > { %v2037_v4 = vpop.eup %2036  ;;  %1515 = vst [vmem:[%s2645_s17 + $0x308] sm:$0xff] %v1259_v37  ;;  %v1261_v47 = vmul.f32 %v1005_v60, %v3130_v14  ;;  %v1007_v6 = vadd.f32 1.0, %v2035_v63  ;;  %2056 = vtanh.f32 %v3208_v28  ;;  %v3280_v31 = vmul.f32 0.5, %v262_v40  ;;  %v266_v60 = vld [vmem:[%s2568_s30 + $0x400] sm:$0xff] }
  0xac   : > { %v2039_v9 = vpop.eup %2038  ;;  %1516 = vst [vmem:[%s2645_s17 + $0x310] sm:$0xff] %v1260_v42  ;;  %v1262_v52 = vmul.f32 %v1006_v1, %v3136_v22  ;;  %v1008_v11 = vadd.f32 1.0, %v2037_v4  ;;  %2058 = vtanh.f32 %v3214_v34  ;;  %v3286_v37 = vmul.f32 0.5, %v263_v45  ;;  %v267_v1 = vld [vmem:[%s2568_s30 + $0x408] sm:$0xff] }
  0xad   : > { %v2041_v14 = vpop.eup %2040  ;;  %1517 = vst [vmem:[%s2645_s17 + $0x318] sm:$0xff] %v1261_v47  ;;  %v1263_v57 = vmul.f32 %v1007_v6, %v3142_v30  ;;  %v1009_v18 = vadd.f32 1.0, %v2039_v9  ;;  %2060 = vtanh.f32 %v3220_v39  ;;  %v3292_v42 = vmul.f32 0.5, %v264_v50  ;;  %v268_v6 = vld [vmem:[%s2568_s30 + $0x410] sm:$0xff] }
  0xae   : > { %v2043_v22 = vpop.eup %2042  ;;  %1518 = vst [vmem:[%s2645_s17 + $0x320] sm:$0xff] %v1262_v52  ;;  %v1264_v62 = vmul.f32 %v1008_v11, %v3148_v35  ;;  %v1010_v26 = vadd.f32 1.0, %v2041_v14  ;;  %2062 = vtanh.f32 %v3226_v44  ;;  %v3298_v47 = vmul.f32 0.5, %v265_v55  ;;  %v269_v11 = vld [vmem:[%s2568_s30 + $0x418] sm:$0xff] }
  0xaf   : > { %v2045_v30 = vpop.eup %2044  ;;  %1519 = vst [vmem:[%s2645_s17 + $0x328] sm:$0xff] %v1263_v57  ;;  %v1265_v3 = vmul.f32 %v1009_v18, %v3154_v41  ;;  %v1011_v33 = vadd.f32 1.0, %v2043_v22  ;;  %2064 = vtanh.f32 %v3232_v49  ;;  %v3304_v52 = vmul.f32 0.5, %v266_v60  ;;  %v270_v18 = vld [vmem:[%s2568_s30 + $0x420] sm:$0xff] }
  0xb0   : > { %v2047_v35 = vpop.eup %2046  ;;  %1520 = vst [vmem:[%s2645_s17 + $0x330] sm:$0xff] %v1264_v62  ;;  %v1266_v8 = vmul.f32 %v1010_v26, %v3160_v46  ;;  %v1012_v38 = vadd.f32 1.0, %v2045_v30  ;;  %2066 = vtanh.f32 %v3238_v54  ;;  %v3310_v57 = vmul.f32 0.5, %v267_v1  ;;  %v271_v26 = vld [vmem:[%s2568_s30 + $0x428] sm:$0xff] }
  0xb1   : > { %v2049_v41 = vpop.eup %2048  ;;  %1521 = vst [vmem:[%s2645_s17 + $0x338] sm:$0xff] %v1265_v3  ;;  %v1267_v13 = vmul.f32 %v1011_v33, %v3166_v51  ;;  %v1013_v43 = vadd.f32 1.0, %v2047_v35  ;;  %2068 = vtanh.f32 %v3244_v59  ;;  %v3316_v62 = vmul.f32 0.5, %v268_v6  ;;  %v272_v33 = vld [vmem:[%s2568_s30 + $0x430] sm:$0xff] }
  0xb2   : > { %v2051_v46 = vpop.eup %2050  ;;  %1522 = vst [vmem:[%s2645_s17 + $0x340] sm:$0xff] %v1266_v8  ;;  %v1268_v15 = vmul.f32 %v1012_v38, %v3172_v56  ;;  %v1014_v48 = vadd.f32 1.0, %v2049_v41  ;;  %2070 = vtanh.f32 %v3250_v0  ;;  %v3322_v3 = vmul.f32 0.5, %v269_v11  ;;  %v273_v38 = vld [vmem:[%s2568_s30 + $0x438] sm:$0xff] }
  0xb3   : > { %v2053_v51 = vpop.eup %2052  ;;  %1523 = vst [vmem:[%s2645_s17 + $0x348] sm:$0xff] %v1267_v13  ;;  %v1269_v17 = vmul.f32 %v1013_v43, %v3178_v61  ;;  %v1015_v53 = vadd.f32 1.0, %v2051_v46  ;;  %2072 = vtanh.f32 %v3256_v5  ;;  %v3328_v8 = vmul.f32 0.5, %v270_v18  ;;  %v274_v43 = vld [vmem:[%s2568_s30 + $0x440] sm:$0xff] }
  0xb4   : > { %v2055_v56 = vpop.eup %2054  ;;  %1524 = vst [vmem:[%s2645_s17 + $0x350] sm:$0xff] %v1268_v15  ;;  %v1270_v19 = vmul.f32 %v1014_v48, %v3184_v2  ;;  %v1016_v58 = vadd.f32 1.0, %v2053_v51  ;;  %2074 = vtanh.f32 %v3262_v10  ;;  %v3334_v13 = vmul.f32 0.5, %v271_v26  ;;  %v275_v48 = vld [vmem:[%s2568_s30 + $0x448] sm:$0xff] }
  0xb5   : > { %v2057_v61 = vpop.eup %2056  ;;  %1525 = vst [vmem:[%s2645_s17 + $0x358] sm:$0xff] %v1269_v17  ;;  %v1271_v21 = vmul.f32 %v1015_v53, %v3190_v7  ;;  %v1017_v63 = vadd.f32 1.0, %v2055_v56  ;;  %2076 = vtanh.f32 %v3268_v16  ;;  %v3340_v15 = vmul.f32 0.5, %v272_v33  ;;  %v276_v53 = vld [vmem:[%s2568_s30 + $0x450] sm:$0xff] }
  0xb6   : > { %v2059_v2 = vpop.eup %2058  ;;  %1526 = vst [vmem:[%s2645_s17 + $0x360] sm:$0xff] %v1270_v19  ;;  %v1272_v23 = vmul.f32 %v1016_v58, %v3196_v12  ;;  %v1018_v4 = vadd.f32 1.0, %v2057_v61  ;;  %2078 = vtanh.f32 %v3274_v24  ;;  %v3346_v17 = vmul.f32 0.5, %v273_v38  ;;  %v277_v58 = vld [vmem:[%s2568_s30 + $0x458] sm:$0xff] }
  0xb7   : > { %v2061_v7 = vpop.eup %2060  ;;  %1527 = vst [vmem:[%s2645_s17 + $0x368] sm:$0xff] %v1271_v21  ;;  %v1273_v25 = vmul.f32 %v1017_v63, %v3202_v20  ;;  %v1019_v9 = vadd.f32 1.0, %v2059_v2  ;;  %2080 = vtanh.f32 %v3280_v31  ;;  %v3352_v19 = vmul.f32 0.5, %v274_v43  ;;  %v278_v63 = vld [vmem:[%s2568_s30 + $0x460] sm:$0xff] }
  0xb8   : > { %v2063_v12 = vpop.eup %2062  ;;  %1528 = vst [vmem:[%s2645_s17 + $0x370] sm:$0xff] %v1272_v23  ;;  %v1274_v27 = vmul.f32 %v1018_v4, %v3208_v28  ;;  %v1020_v14 = vadd.f32 1.0, %v2061_v7  ;;  %2082 = vtanh.f32 %v3286_v37  ;;  %v3358_v21 = vmul.f32 0.5, %v275_v48  ;;  %v279_v4 = vld [vmem:[%s2568_s30 + $0x468] sm:$0xff] }
  0xb9   : > { %v2065_v20 = vpop.eup %2064  ;;  %1529 = vst [vmem:[%s2645_s17 + $0x378] sm:$0xff] %v1273_v25  ;;  %v1275_v29 = vmul.f32 %v1019_v9, %v3214_v34  ;;  %v1021_v22 = vadd.f32 1.0, %v2063_v12  ;;  %2084 = vtanh.f32 %v3292_v42  ;;  %v3364_v23 = vmul.f32 0.5, %v276_v53  ;;  %v280_v9 = vld [vmem:[%s2568_s30 + $0x470] sm:$0xff] }
  0xba   : > { %v2067_v28 = vpop.eup %2066  ;;  %1530 = vst [vmem:[%s2645_s17 + $0x380] sm:$0xff] %v1274_v27  ;;  %v1276_v32 = vmul.f32 %v1020_v14, %v3220_v39  ;;  %v1022_v30 = vadd.f32 1.0, %v2065_v20  ;;  %2086 = vtanh.f32 %v3298_v47  ;;  %v3370_v25 = vmul.f32 0.5, %v277_v58  ;;  %v281_v14 = vld [vmem:[%s2568_s30 + $0x478] sm:$0xff] }
  0xbb   : > { %v2069_v34 = vpop.eup %2068  ;;  %1531 = vst [vmem:[%s2645_s17 + $0x388] sm:$0xff] %v1275_v29  ;;  %v1277_v36 = vmul.f32 %v1021_v22, %v3226_v44  ;;  %v1023_v35 = vadd.f32 1.0, %v2067_v28  ;;  %2088 = vtanh.f32 %v3304_v52  ;;  %v3376_v27 = vmul.f32 0.5, %v278_v63  ;;  %v282_v22 = vld [vmem:[%s2568_s30 + $0x480] sm:$0xff] }
  0xbc   : > { %v2071_v39 = vpop.eup %2070  ;;  %1532 = vst [vmem:[%s2645_s17 + $0x390] sm:$0xff] %v1276_v32  ;;  %v1278_v40 = vmul.f32 %v1022_v30, %v3232_v49  ;;  %v1024_v41 = vadd.f32 1.0, %v2069_v34  ;;  %2090 = vtanh.f32 %v3310_v57  ;;  %v3382_v29 = vmul.f32 0.5, %v279_v4  ;;  %v283_v30 = vld [vmem:[%s2568_s30 + $0x488] sm:$0xff] }
  0xbd   : > { %v2073_v44 = vpop.eup %2072  ;;  %1533 = vst [vmem:[%s2645_s17 + $0x398] sm:$0xff] %v1277_v36  ;;  %v1279_v45 = vmul.f32 %v1023_v35, %v3238_v54  ;;  %v1025_v46 = vadd.f32 1.0, %v2071_v39  ;;  %2092 = vtanh.f32 %v3316_v62  ;;  %v3388_v32 = vmul.f32 0.5, %v280_v9  ;;  %v284_v35 = vld [vmem:[%s2568_s30 + $0x490] sm:$0xff] }
  0xbe   : > { %v2075_v49 = vpop.eup %2074  ;;  %1534 = vst [vmem:[%s2645_s17 + $0x3a0] sm:$0xff] %v1278_v40  ;;  %v1280_v50 = vmul.f32 %v1024_v41, %v3244_v59  ;;  %v1026_v51 = vadd.f32 1.0, %v2073_v44  ;;  %2094 = vtanh.f32 %v3322_v3  ;;  %v3394_v36 = vmul.f32 0.5, %v281_v14  ;;  %v285_v41 = vld [vmem:[%s2568_s30 + $0x498] sm:$0xff] }
  0xbf   : > { %v2077_v54 = vpop.eup %2076  ;;  %1535 = vst [vmem:[%s2645_s17 + $0x3a8] sm:$0xff] %v1279_v45  ;;  %v1281_v55 = vmul.f32 %v1025_v46, %v3250_v0  ;;  %v1027_v56 = vadd.f32 1.0, %v2075_v49  ;;  %2096 = vtanh.f32 %v3328_v8  ;;  %v3400_v40 = vmul.f32 0.5, %v282_v22  ;;  %v286_v46 = vld [vmem:[%s2568_s30 + $0x4a0] sm:$0xff] }
  0xc0   : > { %v2079_v59 = vpop.eup %2078  ;;  %1536 = vst [vmem:[%s2645_s17 + $0x3b0] sm:$0xff] %v1280_v50  ;;  %v1282_v60 = vmul.f32 %v1026_v51, %v3256_v5  ;;  %v1028_v61 = vadd.f32 1.0, %v2077_v54  ;;  %2098 = vtanh.f32 %v3334_v13  ;;  %v3406_v45 = vmul.f32 0.5, %v283_v30  ;;  %v287_v51 = vld [vmem:[%s2568_s30 + $0x4a8] sm:$0xff] }
  0xc1   : > { %v2081_v0 = vpop.eup %2080  ;;  %1537 = vst [vmem:[%s2645_s17 + $0x3b8] sm:$0xff] %v1281_v55  ;;  %v1283_v1 = vmul.f32 %v1027_v56, %v3262_v10  ;;  %v1029_v2 = vadd.f32 1.0, %v2079_v59  ;;  %2100 = vtanh.f32 %v3340_v15  ;;  %v3412_v50 = vmul.f32 0.5, %v284_v35  ;;  %v288_v56 = vld [vmem:[%s2568_s30 + $0x4b0] sm:$0xff] }
  0xc2   : > { %v2083_v5 = vpop.eup %2082  ;;  %1538 = vst [vmem:[%s2645_s17 + $0x3c0] sm:$0xff] %v1282_v60  ;;  %v1284_v6 = vmul.f32 %v1028_v61, %v3268_v16  ;;  %v1030_v7 = vadd.f32 1.0, %v2081_v0  ;;  %2102 = vtanh.f32 %v3346_v17  ;;  %v3418_v55 = vmul.f32 0.5, %v285_v41  ;;  %v289_v61 = vld [vmem:[%s2568_s30 + $0x4b8] sm:$0xff] }
  0xc3   : > { %v2085_v10 = vpop.eup %2084  ;;  %1539 = vst [vmem:[%s2645_s17 + $0x3c8] sm:$0xff] %v1283_v1  ;;  %v1285_v11 = vmul.f32 %v1029_v2, %v3274_v24  ;;  %v1031_v12 = vadd.f32 1.0, %v2083_v5  ;;  %2104 = vtanh.f32 %v3352_v19  ;;  %v3424_v60 = vmul.f32 0.5, %v286_v46  ;;  %v290_v2 = vld [vmem:[%s2568_s30 + $0x4c0] sm:$0xff] }
  0xc4   : > { %v2087_v16 = vpop.eup %2086  ;;  %1540 = vst [vmem:[%s2645_s17 + $0x3d0] sm:$0xff] %v1284_v6  ;;  %v1286_v18 = vmul.f32 %v1030_v7, %v3280_v31  ;;  %v1032_v20 = vadd.f32 1.0, %v2085_v10  ;;  %2106 = vtanh.f32 %v3358_v21  ;;  %v3430_v1 = vmul.f32 0.5, %v287_v51  ;;  %v291_v7 = vld [vmem:[%s2568_s30 + $0x4c8] sm:$0xff] }
  0xc5   : > { %v2089_v24 = vpop.eup %2088  ;;  %1541 = vst [vmem:[%s2645_s17 + $0x3d8] sm:$0xff] %v1285_v11  ;;  %v1287_v26 = vmul.f32 %v1031_v12, %v3286_v37  ;;  %v1033_v28 = vadd.f32 1.0, %v2087_v16  ;;  %2108 = vtanh.f32 %v3364_v23  ;;  %v3436_v6 = vmul.f32 0.5, %v288_v56  ;;  %v292_v12 = vld [vmem:[%s2568_s30 + $0x4d0] sm:$0xff] }
  0xc6   : > { %v2091_v31 = vpop.eup %2090  ;;  %1542 = vst [vmem:[%s2645_s17 + $0x3e0] sm:$0xff] %v1286_v18  ;;  %v1288_v33 = vmul.f32 %v1032_v20, %v3292_v42  ;;  %v1034_v34 = vadd.f32 1.0, %v2089_v24  ;;  %2110 = vtanh.f32 %v3370_v25  ;;  %v3442_v11 = vmul.f32 0.5, %v289_v61  ;;  %v293_v20 = vld [vmem:[%s2568_s30 + $0x4d8] sm:$0xff] }
  0xc7   : > { %v2093_v37 = vpop.eup %2092  ;;  %1543 = vst [vmem:[%s2645_s17 + $0x3e8] sm:$0xff] %v1287_v26  ;;  %v1289_v38 = vmul.f32 %v1033_v28, %v3298_v47  ;;  %v1035_v39 = vadd.f32 1.0, %v2091_v31  ;;  %2112 = vtanh.f32 %v3376_v27  ;;  %v3448_v18 = vmul.f32 0.5, %v290_v2  ;;  %v294_v28 = vld [vmem:[%s2568_s30 + $0x4e0] sm:$0xff] }
  0xc8   : > { %v2095_v42 = vpop.eup %2094  ;;  %1544 = vst [vmem:[%s2645_s17 + $0x3f0] sm:$0xff] %v1288_v33  ;;  %v1290_v43 = vmul.f32 %v1034_v34, %v3304_v52  ;;  %v1036_v44 = vadd.f32 1.0, %v2093_v37  ;;  %2114 = vtanh.f32 %v3382_v29  ;;  %v3454_v26 = vmul.f32 0.5, %v291_v7  ;;  %v295_v34 = vld [vmem:[%s2568_s30 + $0x4e8] sm:$0xff] }
  0xc9   : > { %v2097_v47 = vpop.eup %2096  ;;  %1545 = vst [vmem:[%s2645_s17 + $0x3f8] sm:$0xff] %v1289_v38  ;;  %v1291_v48 = vmul.f32 %v1035_v39, %v3310_v57  ;;  %v1037_v49 = vadd.f32 1.0, %v2095_v42  ;;  %2116 = vtanh.f32 %v3388_v32  ;;  %v3460_v33 = vmul.f32 0.5, %v292_v12  ;;  %v296_v39 = vld [vmem:[%s2568_s30 + $0x4f0] sm:$0xff] }
  0xca   : > { %v2099_v52 = vpop.eup %2098  ;;  %1546 = vst [vmem:[%s2645_s17 + $0x400] sm:$0xff] %v1290_v43  ;;  %v1292_v53 = vmul.f32 %v1036_v44, %v3316_v62  ;;  %v1038_v54 = vadd.f32 1.0, %v2097_v47  ;;  %2118 = vtanh.f32 %v3394_v36  ;;  %v3466_v38 = vmul.f32 0.5, %v293_v20  ;;  %v297_v44 = vld [vmem:[%s2568_s30 + $0x4f8] sm:$0xff] }
  0xcb   : > { %v2101_v57 = vpop.eup %2100  ;;  %1547 = vst [vmem:[%s2645_s17 + $0x408] sm:$0xff] %v1291_v48  ;;  %v1293_v58 = vmul.f32 %v1037_v49, %v3322_v3  ;;  %v1039_v59 = vadd.f32 1.0, %v2099_v52  ;;  %2120 = vtanh.f32 %v3400_v40  ;;  %v3472_v43 = vmul.f32 0.5, %v294_v28  ;;  %v298_v49 = vld [vmem:[%s2568_s30 + $0x500] sm:$0xff] }
  0xcc   : > { %v2103_v62 = vpop.eup %2102  ;;  %1548 = vst [vmem:[%s2645_s17 + $0x410] sm:$0xff] %v1292_v53  ;;  %v1294_v63 = vmul.f32 %v1038_v54, %v3328_v8  ;;  %v1040_v0 = vadd.f32 1.0, %v2101_v57  ;;  %2122 = vtanh.f32 %v3406_v45  ;;  %v3478_v48 = vmul.f32 0.5, %v295_v34  ;;  %v299_v54 = vld [vmem:[%s2568_s30 + $0x508] sm:$0xff] }
  0xcd   : > { %v2105_v3 = vpop.eup %2104  ;;  %1549 = vst [vmem:[%s2645_s17 + $0x418] sm:$0xff] %v1293_v58  ;;  %v1295_v4 = vmul.f32 %v1039_v59, %v3334_v13  ;;  %v1041_v5 = vadd.f32 1.0, %v2103_v62  ;;  %2124 = vtanh.f32 %v3412_v50  ;;  %v3484_v53 = vmul.f32 0.5, %v296_v39  ;;  %v300_v59 = vld [vmem:[%s2568_s30 + $0x510] sm:$0xff] }
  0xce   : > { %v2107_v8 = vpop.eup %2106  ;;  %1550 = vst [vmem:[%s2645_s17 + $0x420] sm:$0xff] %v1294_v63  ;;  %v1296_v9 = vmul.f32 %v1040_v0, %v3340_v15  ;;  %v1042_v10 = vadd.f32 1.0, %v2105_v3  ;;  %2126 = vtanh.f32 %v3418_v55  ;;  %v3490_v58 = vmul.f32 0.5, %v297_v44  ;;  %v301_v0 = vld [vmem:[%s2568_s30 + $0x518] sm:$0xff] }
  0xcf   : > { %v2109_v13 = vpop.eup %2108  ;;  %1551 = vst [vmem:[%s2645_s17 + $0x428] sm:$0xff] %v1295_v4  ;;  %v1297_v14 = vmul.f32 %v1041_v5, %v3346_v17  ;;  %v1043_v16 = vadd.f32 1.0, %v2107_v8  ;;  %2128 = vtanh.f32 %v3424_v60  ;;  %v3496_v63 = vmul.f32 0.5, %v298_v49  ;;  %v302_v5 = vld [vmem:[%s2568_s30 + $0x520] sm:$0xff] }
  0xd0   : > { %v2111_v15 = vpop.eup %2110  ;;  %1552 = vst [vmem:[%s2645_s17 + $0x430] sm:$0xff] %v1296_v9  ;;  %v1298_v22 = vmul.f32 %v1042_v10, %v3352_v19  ;;  %v1044_v24 = vadd.f32 1.0, %v2109_v13  ;;  %2130 = vtanh.f32 %v3430_v1  ;;  %v3502_v4 = vmul.f32 0.5, %v299_v54  ;;  %v303_v10 = vld [vmem:[%s2568_s30 + $0x528] sm:$0xff] }
  0xd1   : > { %v2113_v17 = vpop.eup %2112  ;;  %1553 = vst [vmem:[%s2645_s17 + $0x438] sm:$0xff] %v1297_v14  ;;  %v1299_v30 = vmul.f32 %v1043_v16, %v3358_v21  ;;  %v1045_v31 = vadd.f32 1.0, %v2111_v15  ;;  %2132 = vtanh.f32 %v3436_v6  ;;  %v3508_v9 = vmul.f32 0.5, %v300_v59  ;;  %v304_v16 = vld [vmem:[%s2568_s30 + $0x530] sm:$0xff] }
  0xd2   : > { %v2115_v19 = vpop.eup %2114  ;;  %1554 = vst [vmem:[%s2645_s17 + $0x440] sm:$0xff] %v1298_v22  ;;  %v1300_v35 = vmul.f32 %v1044_v24, %v3364_v23  ;;  %v1046_v37 = vadd.f32 1.0, %v2113_v17  ;;  %2134 = vtanh.f32 %v3442_v11  ;;  %v3514_v14 = vmul.f32 0.5, %v301_v0  ;;  %v305_v24 = vld [vmem:[%s2568_s30 + $0x538] sm:$0xff] }
  0xd3   : > { %v2117_v21 = vpop.eup %2116  ;;  %1555 = vst [vmem:[%s2645_s17 + $0x448] sm:$0xff] %v1299_v30  ;;  %v1301_v41 = vmul.f32 %v1045_v31, %v3370_v25  ;;  %v1047_v42 = vadd.f32 1.0, %v2115_v19  ;;  %2136 = vtanh.f32 %v3448_v18  ;;  %v3520_v22 = vmul.f32 0.5, %v302_v5  ;;  %v306_v31 = vld [vmem:[%s2568_s30 + $0x540] sm:$0xff] }
  0xd4   : > { %v2119_v23 = vpop.eup %2118  ;;  %1556 = vst [vmem:[%s2645_s17 + $0x450] sm:$0xff] %v1300_v35  ;;  %v1302_v46 = vmul.f32 %v1046_v37, %v3376_v27  ;;  %v1048_v47 = vadd.f32 1.0, %v2117_v21  ;;  %2138 = vtanh.f32 %v3454_v26  ;;  %v3526_v30 = vmul.f32 0.5, %v303_v10  ;;  %v307_v37 = vld [vmem:[%s2568_s30 + $0x548] sm:$0xff] }
  0xd5   : > { %v2121_v25 = vpop.eup %2120  ;;  %1557 = vst [vmem:[%s2645_s17 + $0x458] sm:$0xff] %v1301_v41  ;;  %v1303_v51 = vmul.f32 %v1047_v42, %v3382_v29  ;;  %v1049_v52 = vadd.f32 1.0, %v2119_v23  ;;  %2140 = vtanh.f32 %v3460_v33  ;;  %v3532_v35 = vmul.f32 0.5, %v304_v16  ;;  %v308_v42 = vld [vmem:[%s2568_s30 + $0x550] sm:$0xff] }
  0xd6   : > { %v2123_v27 = vpop.eup %2122  ;;  %1558 = vst [vmem:[%s2645_s17 + $0x460] sm:$0xff] %v1302_v46  ;;  %v1304_v56 = vmul.f32 %v1048_v47, %v3388_v32  ;;  %v1050_v57 = vadd.f32 1.0, %v2121_v25  ;;  %2142 = vtanh.f32 %v3466_v38  ;;  %v3538_v41 = vmul.f32 0.5, %v305_v24  ;;  %v309_v47 = vld [vmem:[%s2568_s30 + $0x558] sm:$0xff] }
  0xd7   : > { %v2125_v29 = vpop.eup %2124  ;;  %1559 = vst [vmem:[%s2645_s17 + $0x468] sm:$0xff] %v1303_v51  ;;  %v1305_v61 = vmul.f32 %v1049_v52, %v3394_v36  ;;  %v1051_v62 = vadd.f32 1.0, %v2123_v27  ;;  %2144 = vtanh.f32 %v3472_v43  ;;  %v3544_v46 = vmul.f32 0.5, %v306_v31  ;;  %v310_v52 = vld [vmem:[%s2568_s30 + $0x560] sm:$0xff] }
  0xd8   : > { %v2127_v32 = vpop.eup %2126  ;;  %1560 = vst [vmem:[%s2645_s17 + $0x470] sm:$0xff] %v1304_v56  ;;  %v1306_v2 = vmul.f32 %v1050_v57, %v3400_v40  ;;  %v1052_v3 = vadd.f32 1.0, %v2125_v29  ;;  %2146 = vtanh.f32 %v3478_v48  ;;  %v3550_v51 = vmul.f32 0.5, %v307_v37  ;;  %v311_v57 = vld [vmem:[%s2568_s30 + $0x568] sm:$0xff] }
  0xd9   : > { %v2129_v36 = vpop.eup %2128  ;;  %1561 = vst [vmem:[%s2645_s17 + $0x478] sm:$0xff] %v1305_v61  ;;  %v1307_v7 = vmul.f32 %v1051_v62, %v3406_v45  ;;  %v1053_v8 = vadd.f32 1.0, %v2127_v32  ;;  %2148 = vtanh.f32 %v3484_v53  ;;  %v3556_v56 = vmul.f32 0.5, %v308_v42  ;;  %v312_v62 = vld [vmem:[%s2568_s30 + $0x570] sm:$0xff] }
  0xda   : > { %v2131_v40 = vpop.eup %2130  ;;  %1562 = vst [vmem:[%s2645_s17 + $0x480] sm:$0xff] %v1306_v2  ;;  %v1308_v12 = vmul.f32 %v1052_v3, %v3412_v50  ;;  %v1054_v13 = vadd.f32 1.0, %v2129_v36  ;;  %2150 = vtanh.f32 %v3490_v58  ;;  %v3562_v61 = vmul.f32 0.5, %v309_v47  ;;  %v313_v3 = vld [vmem:[%s2568_s30 + $0x578] sm:$0xff] }
  0xdb   : > { %v2133_v45 = vpop.eup %2132  ;;  %1563 = vst [vmem:[%s2645_s17 + $0x488] sm:$0xff] %v1307_v7  ;;  %v1309_v20 = vmul.f32 %v1053_v8, %v3418_v55  ;;  %v1055_v15 = vadd.f32 1.0, %v2131_v40  ;;  %2152 = vtanh.f32 %v3496_v63  ;;  %v3568_v2 = vmul.f32 0.5, %v310_v52  ;;  %v314_v8 = vld [vmem:[%s2568_s30 + $0x580] sm:$0xff] }
  0xdc   : > { %v2135_v50 = vpop.eup %2134  ;;  %1564 = vst [vmem:[%s2645_s17 + $0x490] sm:$0xff] %v1308_v12  ;;  %v1310_v28 = vmul.f32 %v1054_v13, %v3424_v60  ;;  %v1056_v17 = vadd.f32 1.0, %v2133_v45  ;;  %2154 = vtanh.f32 %v3502_v4  ;;  %v3574_v7 = vmul.f32 0.5, %v311_v57  ;;  %v315_v13 = vld [vmem:[%s2568_s30 + $0x588] sm:$0xff] }
  0xdd   : > { %v2137_v55 = vpop.eup %2136  ;;  %1565 = vst [vmem:[%s2645_s17 + $0x498] sm:$0xff] %v1309_v20  ;;  %v1311_v34 = vmul.f32 %v1055_v15, %v3430_v1  ;;  %v1057_v19 = vadd.f32 1.0, %v2135_v50  ;;  %2156 = vtanh.f32 %v3508_v9  ;;  %v3580_v12 = vmul.f32 0.5, %v312_v62  ;;  %v316_v15 = vld [vmem:[%s2568_s30 + $0x590] sm:$0xff] }
  0xde   : > { %v2139_v60 = vpop.eup %2138  ;;  %1566 = vst [vmem:[%s2645_s17 + $0x4a0] sm:$0xff] %v1310_v28  ;;  %v1312_v39 = vmul.f32 %v1056_v17, %v3436_v6  ;;  %v1058_v21 = vadd.f32 1.0, %v2137_v55  ;;  %2158 = vtanh.f32 %v3514_v14  ;;  %v3586_v20 = vmul.f32 0.5, %v313_v3  ;;  %v317_v17 = vld [vmem:[%s2568_s30 + $0x598] sm:$0xff] }
  0xdf   : > { %v2141_v1 = vpop.eup %2140  ;;  %1567 = vst [vmem:[%s2645_s17 + $0x4a8] sm:$0xff] %v1311_v34  ;;  %v1313_v44 = vmul.f32 %v1057_v19, %v3442_v11  ;;  %v1059_v23 = vadd.f32 1.0, %v2139_v60  ;;  %2160 = vtanh.f32 %v3520_v22  ;;  %v3592_v28 = vmul.f32 0.5, %v314_v8  ;;  %v318_v19 = vld [vmem:[%s2568_s30 + $0x5a0] sm:$0xff] }
  0xe0   : > { %v2143_v6 = vpop.eup %2142  ;;  %1568 = vst [vmem:[%s2645_s17 + $0x4b0] sm:$0xff] %v1312_v39  ;;  %v1314_v49 = vmul.f32 %v1058_v21, %v3448_v18  ;;  %v1060_v25 = vadd.f32 1.0, %v2141_v1  ;;  %2162 = vtanh.f32 %v3526_v30  ;;  %v3598_v34 = vmul.f32 0.5, %v315_v13  ;;  %v319_v21 = vld [vmem:[%s2568_s30 + $0x5a8] sm:$0xff] }
  0xe1   : > { %v2145_v11 = vpop.eup %2144  ;;  %1569 = vst [vmem:[%s2645_s17 + $0x4b8] sm:$0xff] %v1313_v44  ;;  %v1315_v54 = vmul.f32 %v1059_v23, %v3454_v26  ;;  %v1061_v27 = vadd.f32 1.0, %v2143_v6  ;;  %2164 = vtanh.f32 %v3532_v35  ;;  %v3604_v39 = vmul.f32 0.5, %v316_v15  ;;  %v320_v23 = vld [vmem:[%s2568_s30 + $0x5b0] sm:$0xff] }
  0xe2   : > { %v2147_v18 = vpop.eup %2146  ;;  %1570 = vst [vmem:[%s2645_s17 + $0x4c0] sm:$0xff] %v1314_v49  ;;  %v1316_v59 = vmul.f32 %v1060_v25, %v3460_v33  ;;  %v1062_v29 = vadd.f32 1.0, %v2145_v11  ;;  %2166 = vtanh.f32 %v3538_v41  ;;  %v3610_v44 = vmul.f32 0.5, %v317_v17  ;;  %v321_v25 = vld [vmem:[%s2568_s30 + $0x5b8] sm:$0xff] }
  0xe3   : > { %v2149_v26 = vpop.eup %2148  ;;  %1571 = vst [vmem:[%s2645_s17 + $0x4c8] sm:$0xff] %v1315_v54  ;;  %v1317_v0 = vmul.f32 %v1061_v27, %v3466_v38  ;;  %v1063_v32 = vadd.f32 1.0, %v2147_v18  ;;  %2168 = vtanh.f32 %v3544_v46  ;;  %v3616_v49 = vmul.f32 0.5, %v318_v19  ;;  %v322_v27 = vld [vmem:[%s2568_s30 + $0x5c0] sm:$0xff] }
  0xe4   : > { %v2151_v33 = vpop.eup %2150  ;;  %1572 = vst [vmem:[%s2645_s17 + $0x4d0] sm:$0xff] %v1316_v59  ;;  %v1318_v5 = vmul.f32 %v1062_v29, %v3472_v43  ;;  %v1064_v36 = vadd.f32 1.0, %v2149_v26  ;;  %2170 = vtanh.f32 %v3550_v51  ;;  %v3622_v54 = vmul.f32 0.5, %v319_v21  ;;  %v323_v29 = vld [vmem:[%s2568_s30 + $0x5c8] sm:$0xff] }
  0xe5   : > { %v2153_v38 = vpop.eup %2152  ;;  %1573 = vst [vmem:[%s2645_s17 + $0x4d8] sm:$0xff] %v1317_v0  ;;  %v1319_v10 = vmul.f32 %v1063_v32, %v3478_v48  ;;  %v1065_v40 = vadd.f32 1.0, %v2151_v33  ;;  %2172 = vtanh.f32 %v3556_v56  ;;  %v3628_v59 = vmul.f32 0.5, %v320_v23  ;;  %v324_v32 = vld [vmem:[%s2568_s30 + $0x5d0] sm:$0xff] }
  0xe6   : > { %v2155_v43 = vpop.eup %2154  ;;  %1574 = vst [vmem:[%s2645_s17 + $0x4e0] sm:$0xff] %v1318_v5  ;;  %v1320_v16 = vmul.f32 %v1064_v36, %v3484_v53  ;;  %v1066_v45 = vadd.f32 1.0, %v2153_v38  ;;  %2174 = vtanh.f32 %v3562_v61  ;;  %v3634_v0 = vmul.f32 0.5, %v321_v25  ;;  %v325_v36 = vld [vmem:[%s2568_s30 + $0x5d8] sm:$0xff] }
  0xe7   : > { %v2157_v48 = vpop.eup %2156  ;;  %1575 = vst [vmem:[%s2645_s17 + $0x4e8] sm:$0xff] %v1319_v10  ;;  %v1321_v24 = vmul.f32 %v1065_v40, %v3490_v58  ;;  %v1067_v50 = vadd.f32 1.0, %v2155_v43  ;;  %2176 = vtanh.f32 %v3568_v2  ;;  %v3640_v5 = vmul.f32 0.5, %v322_v27  ;;  %v326_v40 = vld [vmem:[%s2568_s30 + $0x5e0] sm:$0xff] }
  0xe8   : > { %v2159_v53 = vpop.eup %2158  ;;  %1576 = vst [vmem:[%s2645_s17 + $0x4f0] sm:$0xff] %v1320_v16  ;;  %v1322_v31 = vmul.f32 %v1066_v45, %v3496_v63  ;;  %v1068_v55 = vadd.f32 1.0, %v2157_v48  ;;  %2178 = vtanh.f32 %v3574_v7  ;;  %v3646_v10 = vmul.f32 0.5, %v323_v29  ;;  %v327_v45 = vld [vmem:[%s2568_s30 + $0x5e8] sm:$0xff] }
  0xe9   : > { %v2161_v58 = vpop.eup %2160  ;;  %1577 = vst [vmem:[%s2645_s17 + $0x4f8] sm:$0xff] %v1321_v24  ;;  %v1323_v37 = vmul.f32 %v1067_v50, %v3502_v4  ;;  %v1069_v60 = vadd.f32 1.0, %v2159_v53  ;;  %2180 = vtanh.f32 %v3580_v12  ;;  %v3652_v16 = vmul.f32 0.5, %v324_v32  ;;  %v328_v50 = vld [vmem:[%s2568_s30 + $0x5f0] sm:$0xff] }
  0xea   : > { %v2163_v63 = vpop.eup %2162  ;;  %1578 = vst [vmem:[%s2645_s17 + $0x500] sm:$0xff] %v1322_v31  ;;  %v1324_v42 = vmul.f32 %v1068_v55, %v3508_v9  ;;  %v1070_v1 = vadd.f32 1.0, %v2161_v58  ;;  %2182 = vtanh.f32 %v3586_v20  ;;  %v3658_v24 = vmul.f32 0.5, %v325_v36  ;;  %v329_v55 = vld [vmem:[%s2568_s30 + $0x5f8] sm:$0xff] }
  0xeb   : > { %v2165_v4 = vpop.eup %2164  ;;  %1579 = vst [vmem:[%s2645_s17 + $0x508] sm:$0xff] %v1323_v37  ;;  %v1325_v47 = vmul.f32 %v1069_v60, %v3514_v14  ;;  %v1071_v6 = vadd.f32 1.0, %v2163_v63  ;;  %2184 = vtanh.f32 %v3592_v28  ;;  %v3664_v31 = vmul.f32 0.5, %v326_v40  ;;  %v330_v60 = vld [vmem:[%s2568_s30 + $0x600] sm:$0xff] }
  0xec   : > { %v2167_v9 = vpop.eup %2166  ;;  %1580 = vst [vmem:[%s2645_s17 + $0x510] sm:$0xff] %v1324_v42  ;;  %v1326_v52 = vmul.f32 %v1070_v1, %v3520_v22  ;;  %v1072_v11 = vadd.f32 1.0, %v2165_v4  ;;  %2186 = vtanh.f32 %v3598_v34  ;;  %v3670_v37 = vmul.f32 0.5, %v327_v45  ;;  %v331_v1 = vld [vmem:[%s2568_s30 + $0x608] sm:$0xff] }
  0xed   : > { %v2169_v14 = vpop.eup %2168  ;;  %1581 = vst [vmem:[%s2645_s17 + $0x518] sm:$0xff] %v1325_v47  ;;  %v1327_v57 = vmul.f32 %v1071_v6, %v3526_v30  ;;  %v1073_v18 = vadd.f32 1.0, %v2167_v9  ;;  %2188 = vtanh.f32 %v3604_v39  ;;  %v3676_v42 = vmul.f32 0.5, %v328_v50  ;;  %v332_v6 = vld [vmem:[%s2568_s30 + $0x610] sm:$0xff] }
  0xee   : > { %v2171_v22 = vpop.eup %2170  ;;  %1582 = vst [vmem:[%s2645_s17 + $0x520] sm:$0xff] %v1326_v52  ;;  %v1328_v62 = vmul.f32 %v1072_v11, %v3532_v35  ;;  %v1074_v26 = vadd.f32 1.0, %v2169_v14  ;;  %2190 = vtanh.f32 %v3610_v44  ;;  %v3682_v47 = vmul.f32 0.5, %v329_v55  ;;  %v333_v11 = vld [vmem:[%s2568_s30 + $0x618] sm:$0xff] }
  0xef   : > { %v2173_v30 = vpop.eup %2172  ;;  %1583 = vst [vmem:[%s2645_s17 + $0x528] sm:$0xff] %v1327_v57  ;;  %v1329_v3 = vmul.f32 %v1073_v18, %v3538_v41  ;;  %v1075_v33 = vadd.f32 1.0, %v2171_v22  ;;  %2192 = vtanh.f32 %v3616_v49  ;;  %v3688_v52 = vmul.f32 0.5, %v330_v60  ;;  %v334_v18 = vld [vmem:[%s2568_s30 + $0x620] sm:$0xff] }
  0xf0   : > { %v2175_v35 = vpop.eup %2174  ;;  %1584 = vst [vmem:[%s2645_s17 + $0x530] sm:$0xff] %v1328_v62  ;;  %v1330_v8 = vmul.f32 %v1074_v26, %v3544_v46  ;;  %v1076_v38 = vadd.f32 1.0, %v2173_v30  ;;  %2194 = vtanh.f32 %v3622_v54  ;;  %v3694_v57 = vmul.f32 0.5, %v331_v1  ;;  %v335_v26 = vld [vmem:[%s2568_s30 + $0x628] sm:$0xff] }
  0xf1   : > { %v2177_v41 = vpop.eup %2176  ;;  %1585 = vst [vmem:[%s2645_s17 + $0x538] sm:$0xff] %v1329_v3  ;;  %v1331_v13 = vmul.f32 %v1075_v33, %v3550_v51  ;;  %v1077_v43 = vadd.f32 1.0, %v2175_v35  ;;  %2196 = vtanh.f32 %v3628_v59  ;;  %v3700_v62 = vmul.f32 0.5, %v332_v6  ;;  %v336_v33 = vld [vmem:[%s2568_s30 + $0x630] sm:$0xff] }
  0xf2   : > { %v2179_v46 = vpop.eup %2178  ;;  %1586 = vst [vmem:[%s2645_s17 + $0x540] sm:$0xff] %v1330_v8  ;;  %v1332_v15 = vmul.f32 %v1076_v38, %v3556_v56  ;;  %v1078_v48 = vadd.f32 1.0, %v2177_v41  ;;  %2198 = vtanh.f32 %v3634_v0  ;;  %v3706_v3 = vmul.f32 0.5, %v333_v11  ;;  %v337_v38 = vld [vmem:[%s2568_s30 + $0x638] sm:$0xff] }
  0xf3   : > { %v2181_v51 = vpop.eup %2180  ;;  %1587 = vst [vmem:[%s2645_s17 + $0x548] sm:$0xff] %v1331_v13  ;;  %v1333_v17 = vmul.f32 %v1077_v43, %v3562_v61  ;;  %v1079_v53 = vadd.f32 1.0, %v2179_v46  ;;  %2200 = vtanh.f32 %v3640_v5  ;;  %v3712_v8 = vmul.f32 0.5, %v334_v18  ;;  %v338_v43 = vld [vmem:[%s2568_s30 + $0x640] sm:$0xff] }
  0xf4   : > { %v2183_v56 = vpop.eup %2182  ;;  %1588 = vst [vmem:[%s2645_s17 + $0x550] sm:$0xff] %v1332_v15  ;;  %v1334_v19 = vmul.f32 %v1078_v48, %v3568_v2  ;;  %v1080_v58 = vadd.f32 1.0, %v2181_v51  ;;  %2202 = vtanh.f32 %v3646_v10  ;;  %v3718_v13 = vmul.f32 0.5, %v335_v26  ;;  %v339_v48 = vld [vmem:[%s2568_s30 + $0x648] sm:$0xff] }
  0xf5   : > { %v2185_v61 = vpop.eup %2184  ;;  %1589 = vst [vmem:[%s2645_s17 + $0x558] sm:$0xff] %v1333_v17  ;;  %v1335_v21 = vmul.f32 %v1079_v53, %v3574_v7  ;;  %v1081_v63 = vadd.f32 1.0, %v2183_v56  ;;  %2204 = vtanh.f32 %v3652_v16  ;;  %v3724_v15 = vmul.f32 0.5, %v336_v33  ;;  %v340_v53 = vld [vmem:[%s2568_s30 + $0x650] sm:$0xff] }
  0xf6   : > { %v2187_v2 = vpop.eup %2186  ;;  %1590 = vst [vmem:[%s2645_s17 + $0x560] sm:$0xff] %v1334_v19  ;;  %v1336_v23 = vmul.f32 %v1080_v58, %v3580_v12  ;;  %v1082_v4 = vadd.f32 1.0, %v2185_v61  ;;  %2206 = vtanh.f32 %v3658_v24  ;;  %v3730_v17 = vmul.f32 0.5, %v337_v38  ;;  %v341_v58 = vld [vmem:[%s2568_s30 + $0x658] sm:$0xff] }
  0xf7   : > { %v2189_v7 = vpop.eup %2188  ;;  %1591 = vst [vmem:[%s2645_s17 + $0x568] sm:$0xff] %v1335_v21  ;;  %v1337_v25 = vmul.f32 %v1081_v63, %v3586_v20  ;;  %v1083_v9 = vadd.f32 1.0, %v2187_v2  ;;  %2208 = vtanh.f32 %v3664_v31  ;;  %v3736_v19 = vmul.f32 0.5, %v338_v43  ;;  %v342_v63 = vld [vmem:[%s2568_s30 + $0x660] sm:$0xff] }
  0xf8   : > { %v2191_v12 = vpop.eup %2190  ;;  %1592 = vst [vmem:[%s2645_s17 + $0x570] sm:$0xff] %v1336_v23  ;;  %v1338_v27 = vmul.f32 %v1082_v4, %v3592_v28  ;;  %v1084_v14 = vadd.f32 1.0, %v2189_v7  ;;  %2210 = vtanh.f32 %v3670_v37  ;;  %v3742_v21 = vmul.f32 0.5, %v339_v48  ;;  %v343_v4 = vld [vmem:[%s2568_s30 + $0x668] sm:$0xff] }
  0xf9   : > { %v2193_v20 = vpop.eup %2192  ;;  %1593 = vst [vmem:[%s2645_s17 + $0x578] sm:$0xff] %v1337_v25  ;;  %v1339_v29 = vmul.f32 %v1083_v9, %v3598_v34  ;;  %v1085_v22 = vadd.f32 1.0, %v2191_v12  ;;  %2212 = vtanh.f32 %v3676_v42  ;;  %v3748_v23 = vmul.f32 0.5, %v340_v53  ;;  %v344_v9 = vld [vmem:[%s2568_s30 + $0x670] sm:$0xff] }
  0xfa   : > { %v2195_v28 = vpop.eup %2194  ;;  %1594 = vst [vmem:[%s2645_s17 + $0x580] sm:$0xff] %v1338_v27  ;;  %v1340_v32 = vmul.f32 %v1084_v14, %v3604_v39  ;;  %v1086_v30 = vadd.f32 1.0, %v2193_v20  ;;  %2214 = vtanh.f32 %v3682_v47  ;;  %v3754_v25 = vmul.f32 0.5, %v341_v58  ;;  %v345_v14 = vld [vmem:[%s2568_s30 + $0x678] sm:$0xff] }
  0xfb   : > { %v2197_v34 = vpop.eup %2196  ;;  %1595 = vst [vmem:[%s2645_s17 + $0x588] sm:$0xff] %v1339_v29  ;;  %v1341_v36 = vmul.f32 %v1085_v22, %v3610_v44  ;;  %v1087_v35 = vadd.f32 1.0, %v2195_v28  ;;  %2216 = vtanh.f32 %v3688_v52  ;;  %v3760_v27 = vmul.f32 0.5, %v342_v63  ;;  %v346_v22 = vld [vmem:[%s2568_s30 + $0x680] sm:$0xff] }
  0xfc   : > { %v2199_v39 = vpop.eup %2198  ;;  %1596 = vst [vmem:[%s2645_s17 + $0x590] sm:$0xff] %v1340_v32  ;;  %v1342_v40 = vmul.f32 %v1086_v30, %v3616_v49  ;;  %v1088_v41 = vadd.f32 1.0, %v2197_v34  ;;  %2218 = vtanh.f32 %v3694_v57  ;;  %v3766_v29 = vmul.f32 0.5, %v343_v4  ;;  %v347_v30 = vld [vmem:[%s2568_s30 + $0x688] sm:$0xff] }
  0xfd   : > { %v2201_v44 = vpop.eup %2200  ;;  %1597 = vst [vmem:[%s2645_s17 + $0x598] sm:$0xff] %v1341_v36  ;;  %v1343_v45 = vmul.f32 %v1087_v35, %v3622_v54  ;;  %v1089_v46 = vadd.f32 1.0, %v2199_v39  ;;  %2220 = vtanh.f32 %v3700_v62  ;;  %v3772_v32 = vmul.f32 0.5, %v344_v9  ;;  %v348_v35 = vld [vmem:[%s2568_s30 + $0x690] sm:$0xff] }
  0xfe   : > { %v2203_v49 = vpop.eup %2202  ;;  %1598 = vst [vmem:[%s2645_s17 + $0x5a0] sm:$0xff] %v1342_v40  ;;  %v1344_v50 = vmul.f32 %v1088_v41, %v3628_v59  ;;  %v1090_v51 = vadd.f32 1.0, %v2201_v44  ;;  %2222 = vtanh.f32 %v3706_v3  ;;  %v3778_v36 = vmul.f32 0.5, %v345_v14  ;;  %v349_v41 = vld [vmem:[%s2568_s30 + $0x698] sm:$0xff] }
  0xff   : > { %v2205_v54 = vpop.eup %2204  ;;  %1599 = vst [vmem:[%s2645_s17 + $0x5a8] sm:$0xff] %v1343_v45  ;;  %v1345_v55 = vmul.f32 %v1089_v46, %v3634_v0  ;;  %v1091_v56 = vadd.f32 1.0, %v2203_v49  ;;  %2224 = vtanh.f32 %v3712_v8  ;;  %v3784_v40 = vmul.f32 0.5, %v346_v22  ;;  %v350_v46 = vld [vmem:[%s2568_s30 + $0x6a0] sm:$0xff] }
 0x100   : > { %v2207_v59 = vpop.eup %2206  ;;  %1600 = vst [vmem:[%s2645_s17 + $0x5b0] sm:$0xff] %v1344_v50  ;;  %v1346_v60 = vmul.f32 %v1090_v51, %v3640_v5  ;;  %v1092_v61 = vadd.f32 1.0, %v2205_v54  ;;  %2226 = vtanh.f32 %v3718_v13  ;;  %v3790_v45 = vmul.f32 0.5, %v347_v30  ;;  %v351_v51 = vld [vmem:[%s2568_s30 + $0x6a8] sm:$0xff] }
 0x101   : > { %v2209_v0 = vpop.eup %2208  ;;  %1601 = vst [vmem:[%s2645_s17 + $0x5b8] sm:$0xff] %v1345_v55  ;;  %v1347_v1 = vmul.f32 %v1091_v56, %v3646_v10  ;;  %v1093_v2 = vadd.f32 1.0, %v2207_v59  ;;  %2228 = vtanh.f32 %v3724_v15  ;;  %v3796_v50 = vmul.f32 0.5, %v348_v35  ;;  %v352_v56 = vld [vmem:[%s2568_s30 + $0x6b0] sm:$0xff] }
 0x102   : > { %v2211_v5 = vpop.eup %2210  ;;  %1602 = vst [vmem:[%s2645_s17 + $0x5c0] sm:$0xff] %v1346_v60  ;;  %v1348_v6 = vmul.f32 %v1092_v61, %v3652_v16  ;;  %v1094_v7 = vadd.f32 1.0, %v2209_v0  ;;  %2230 = vtanh.f32 %v3730_v17  ;;  %v3802_v55 = vmul.f32 0.5, %v349_v41  ;;  %v353_v61 = vld [vmem:[%s2568_s30 + $0x6b8] sm:$0xff] }
 0x103   : > { %v2213_v10 = vpop.eup %2212  ;;  %1603 = vst [vmem:[%s2645_s17 + $0x5c8] sm:$0xff] %v1347_v1  ;;  %v1349_v11 = vmul.f32 %v1093_v2, %v3658_v24  ;;  %v1095_v12 = vadd.f32 1.0, %v2211_v5  ;;  %2232 = vtanh.f32 %v3736_v19  ;;  %v3808_v60 = vmul.f32 0.5, %v350_v46  ;;  %v354_v2 = vld [vmem:[%s2568_s30 + $0x6c0] sm:$0xff] }
 0x104   : > { %v2215_v16 = vpop.eup %2214  ;;  %1604 = vst [vmem:[%s2645_s17 + $0x5d0] sm:$0xff] %v1348_v6  ;;  %v1350_v18 = vmul.f32 %v1094_v7, %v3664_v31  ;;  %v1096_v20 = vadd.f32 1.0, %v2213_v10  ;;  %2234 = vtanh.f32 %v3742_v21  ;;  %v3814_v1 = vmul.f32 0.5, %v351_v51  ;;  %v355_v7 = vld [vmem:[%s2568_s30 + $0x6c8] sm:$0xff] }
 0x105   : > { %v2217_v24 = vpop.eup %2216  ;;  %1605 = vst [vmem:[%s2645_s17 + $0x5d8] sm:$0xff] %v1349_v11  ;;  %v1351_v26 = vmul.f32 %v1095_v12, %v3670_v37  ;;  %v1097_v28 = vadd.f32 1.0, %v2215_v16  ;;  %2236 = vtanh.f32 %v3748_v23  ;;  %v3820_v6 = vmul.f32 0.5, %v352_v56  ;;  %v356_v12 = vld [vmem:[%s2568_s30 + $0x6d0] sm:$0xff] }
 0x106   : > { %v2219_v31 = vpop.eup %2218  ;;  %1606 = vst [vmem:[%s2645_s17 + $0x5e0] sm:$0xff] %v1350_v18  ;;  %v1352_v33 = vmul.f32 %v1096_v20, %v3676_v42  ;;  %v1098_v34 = vadd.f32 1.0, %v2217_v24  ;;  %2238 = vtanh.f32 %v3754_v25  ;;  %v3826_v11 = vmul.f32 0.5, %v353_v61  ;;  %v357_v20 = vld [vmem:[%s2568_s30 + $0x6d8] sm:$0xff] }
 0x107   : > { %v2221_v37 = vpop.eup %2220  ;;  %1607 = vst [vmem:[%s2645_s17 + $0x5e8] sm:$0xff] %v1351_v26  ;;  %v1353_v38 = vmul.f32 %v1097_v28, %v3682_v47  ;;  %v1099_v39 = vadd.f32 1.0, %v2219_v31  ;;  %2240 = vtanh.f32 %v3760_v27  ;;  %v3832_v18 = vmul.f32 0.5, %v354_v2  ;;  %v358_v28 = vld [vmem:[%s2568_s30 + $0x6e0] sm:$0xff] }
 0x108   : > { %v2223_v42 = vpop.eup %2222  ;;  %1608 = vst [vmem:[%s2645_s17 + $0x5f0] sm:$0xff] %v1352_v33  ;;  %v1354_v43 = vmul.f32 %v1098_v34, %v3688_v52  ;;  %v1100_v44 = vadd.f32 1.0, %v2221_v37  ;;  %2242 = vtanh.f32 %v3766_v29  ;;  %v3838_v26 = vmul.f32 0.5, %v355_v7  ;;  %v359_v34 = vld [vmem:[%s2568_s30 + $0x6e8] sm:$0xff] }
 0x109   : > { %v2225_v47 = vpop.eup %2224  ;;  %1609 = vst [vmem:[%s2645_s17 + $0x5f8] sm:$0xff] %v1353_v38  ;;  %v1355_v48 = vmul.f32 %v1099_v39, %v3694_v57  ;;  %v1101_v49 = vadd.f32 1.0, %v2223_v42  ;;  %2244 = vtanh.f32 %v3772_v32  ;;  %v3844_v33 = vmul.f32 0.5, %v356_v12  ;;  %v360_v39 = vld [vmem:[%s2568_s30 + $0x6f0] sm:$0xff] }
 0x10a   : > { %v2227_v52 = vpop.eup %2226  ;;  %1610 = vst [vmem:[%s2645_s17 + $0x600] sm:$0xff] %v1354_v43  ;;  %v1356_v53 = vmul.f32 %v1100_v44, %v3700_v62  ;;  %v1102_v54 = vadd.f32 1.0, %v2225_v47  ;;  %2246 = vtanh.f32 %v3778_v36  ;;  %v3850_v38 = vmul.f32 0.5, %v357_v20  ;;  %v361_v44 = vld [vmem:[%s2568_s30 + $0x6f8] sm:$0xff] }
 0x10b   : > { %v2229_v57 = vpop.eup %2228  ;;  %1611 = vst [vmem:[%s2645_s17 + $0x608] sm:$0xff] %v1355_v48  ;;  %v1357_v58 = vmul.f32 %v1101_v49, %v3706_v3  ;;  %v1103_v59 = vadd.f32 1.0, %v2227_v52  ;;  %2248 = vtanh.f32 %v3784_v40  ;;  %v3856_v43 = vmul.f32 0.5, %v358_v28  ;;  %v362_v49 = vld [vmem:[%s2568_s30 + $0x700] sm:$0xff] }
 0x10c   : > { %v2231_v62 = vpop.eup %2230  ;;  %1612 = vst [vmem:[%s2645_s17 + $0x610] sm:$0xff] %v1356_v53  ;;  %v1358_v63 = vmul.f32 %v1102_v54, %v3712_v8  ;;  %v1104_v0 = vadd.f32 1.0, %v2229_v57  ;;  %2250 = vtanh.f32 %v3790_v45  ;;  %v3862_v48 = vmul.f32 0.5, %v359_v34  ;;  %v363_v54 = vld [vmem:[%s2568_s30 + $0x708] sm:$0xff] }
 0x10d   : > { %v2233_v3 = vpop.eup %2232  ;;  %1613 = vst [vmem:[%s2645_s17 + $0x618] sm:$0xff] %v1357_v58  ;;  %v1359_v4 = vmul.f32 %v1103_v59, %v3718_v13  ;;  %v1105_v5 = vadd.f32 1.0, %v2231_v62  ;;  %2252 = vtanh.f32 %v3796_v50  ;;  %v3868_v53 = vmul.f32 0.5, %v360_v39  ;;  %v364_v59 = vld [vmem:[%s2568_s30 + $0x710] sm:$0xff] }
 0x10e   : > { %v2235_v8 = vpop.eup %2234  ;;  %1614 = vst [vmem:[%s2645_s17 + $0x620] sm:$0xff] %v1358_v63  ;;  %v1360_v9 = vmul.f32 %v1104_v0, %v3724_v15  ;;  %v1106_v10 = vadd.f32 1.0, %v2233_v3  ;;  %2254 = vtanh.f32 %v3802_v55  ;;  %v3874_v58 = vmul.f32 0.5, %v361_v44  ;;  %v365_v0 = vld [vmem:[%s2568_s30 + $0x718] sm:$0xff] }
 0x10f   : > { %v2237_v13 = vpop.eup %2236  ;;  %1615 = vst [vmem:[%s2645_s17 + $0x628] sm:$0xff] %v1359_v4  ;;  %v1361_v14 = vmul.f32 %v1105_v5, %v3730_v17  ;;  %v1107_v16 = vadd.f32 1.0, %v2235_v8  ;;  %2256 = vtanh.f32 %v3808_v60  ;;  %v3880_v63 = vmul.f32 0.5, %v362_v49  ;;  %v366_v5 = vld [vmem:[%s2568_s30 + $0x720] sm:$0xff] }
 0x110   : > { %v2239_v15 = vpop.eup %2238  ;;  %1616 = vst [vmem:[%s2645_s17 + $0x630] sm:$0xff] %v1360_v9  ;;  %v1362_v22 = vmul.f32 %v1106_v10, %v3736_v19  ;;  %v1108_v24 = vadd.f32 1.0, %v2237_v13  ;;  %2258 = vtanh.f32 %v3814_v1  ;;  %v3886_v4 = vmul.f32 0.5, %v363_v54  ;;  %v367_v10 = vld [vmem:[%s2568_s30 + $0x728] sm:$0xff] }
 0x111   : > { %v2241_v17 = vpop.eup %2240  ;;  %1617 = vst [vmem:[%s2645_s17 + $0x638] sm:$0xff] %v1361_v14  ;;  %v1363_v30 = vmul.f32 %v1107_v16, %v3742_v21  ;;  %v1109_v31 = vadd.f32 1.0, %v2239_v15  ;;  %2260 = vtanh.f32 %v3820_v6  ;;  %v3892_v9 = vmul.f32 0.5, %v364_v59  ;;  %v368_v16 = vld [vmem:[%s2568_s30 + $0x730] sm:$0xff] }
 0x112   : > { %v2243_v19 = vpop.eup %2242  ;;  %1618 = vst [vmem:[%s2645_s17 + $0x640] sm:$0xff] %v1362_v22  ;;  %v1364_v35 = vmul.f32 %v1108_v24, %v3748_v23  ;;  %v1110_v37 = vadd.f32 1.0, %v2241_v17  ;;  %2262 = vtanh.f32 %v3826_v11  ;;  %v3898_v14 = vmul.f32 0.5, %v365_v0  ;;  %v369_v24 = vld [vmem:[%s2568_s30 + $0x738] sm:$0xff] }
 0x113   : > { %v2245_v21 = vpop.eup %2244  ;;  %1619 = vst [vmem:[%s2645_s17 + $0x648] sm:$0xff] %v1363_v30  ;;  %v1365_v41 = vmul.f32 %v1109_v31, %v3754_v25  ;;  %v1111_v42 = vadd.f32 1.0, %v2243_v19  ;;  %2264 = vtanh.f32 %v3832_v18  ;;  %v3904_v22 = vmul.f32 0.5, %v366_v5  ;;  %v370_v31 = vld [vmem:[%s2568_s30 + $0x740] sm:$0xff] }
 0x114   : > { %v2247_v23 = vpop.eup %2246  ;;  %1620 = vst [vmem:[%s2645_s17 + $0x650] sm:$0xff] %v1364_v35  ;;  %v1366_v46 = vmul.f32 %v1110_v37, %v3760_v27  ;;  %v1112_v47 = vadd.f32 1.0, %v2245_v21  ;;  %2266 = vtanh.f32 %v3838_v26  ;;  %v3910_v30 = vmul.f32 0.5, %v367_v10  ;;  %v371_v37 = vld [vmem:[%s2568_s30 + $0x748] sm:$0xff] }
 0x115   : > { %v2249_v25 = vpop.eup %2248  ;;  %1621 = vst [vmem:[%s2645_s17 + $0x658] sm:$0xff] %v1365_v41  ;;  %v1367_v51 = vmul.f32 %v1111_v42, %v3766_v29  ;;  %v1113_v52 = vadd.f32 1.0, %v2247_v23  ;;  %2268 = vtanh.f32 %v3844_v33  ;;  %v3916_v35 = vmul.f32 0.5, %v368_v16  ;;  %v372_v42 = vld [vmem:[%s2568_s30 + $0x750] sm:$0xff] }
 0x116   : > { %v2251_v27 = vpop.eup %2250  ;;  %1622 = vst [vmem:[%s2645_s17 + $0x660] sm:$0xff] %v1366_v46  ;;  %v1368_v56 = vmul.f32 %v1112_v47, %v3772_v32  ;;  %v1114_v57 = vadd.f32 1.0, %v2249_v25  ;;  %2270 = vtanh.f32 %v3850_v38  ;;  %v3922_v41 = vmul.f32 0.5, %v369_v24  ;;  %v373_v47 = vld [vmem:[%s2568_s30 + $0x758] sm:$0xff] }
 0x117   : > { %v2253_v29 = vpop.eup %2252  ;;  %1623 = vst [vmem:[%s2645_s17 + $0x668] sm:$0xff] %v1367_v51  ;;  %v1369_v61 = vmul.f32 %v1113_v52, %v3778_v36  ;;  %v1115_v62 = vadd.f32 1.0, %v2251_v27  ;;  %2272 = vtanh.f32 %v3856_v43  ;;  %v3928_v46 = vmul.f32 0.5, %v370_v31  ;;  %v374_v52 = vld [vmem:[%s2568_s30 + $0x760] sm:$0xff] }
 0x118   : > { %v2255_v32 = vpop.eup %2254  ;;  %1624 = vst [vmem:[%s2645_s17 + $0x670] sm:$0xff] %v1368_v56  ;;  %v1370_v2 = vmul.f32 %v1114_v57, %v3784_v40  ;;  %v1116_v3 = vadd.f32 1.0, %v2253_v29  ;;  %2274 = vtanh.f32 %v3862_v48  ;;  %v3934_v51 = vmul.f32 0.5, %v371_v37  ;;  %v375_v57 = vld [vmem:[%s2568_s30 + $0x768] sm:$0xff] }
 0x119   : > { %v2257_v36 = vpop.eup %2256  ;;  %1625 = vst [vmem:[%s2645_s17 + $0x678] sm:$0xff] %v1369_v61  ;;  %v1371_v7 = vmul.f32 %v1115_v62, %v3790_v45  ;;  %v1117_v8 = vadd.f32 1.0, %v2255_v32  ;;  %2276 = vtanh.f32 %v3868_v53  ;;  %v3940_v56 = vmul.f32 0.5, %v372_v42  ;;  %v376_v62 = vld [vmem:[%s2568_s30 + $0x770] sm:$0xff] }
 0x11a   : > { %v2259_v40 = vpop.eup %2258  ;;  %1626 = vst [vmem:[%s2645_s17 + $0x680] sm:$0xff] %v1370_v2  ;;  %v1372_v12 = vmul.f32 %v1116_v3, %v3796_v50  ;;  %v1118_v13 = vadd.f32 1.0, %v2257_v36  ;;  %2278 = vtanh.f32 %v3874_v58  ;;  %v3946_v61 = vmul.f32 0.5, %v373_v47  ;;  %v377_v3 = vld [vmem:[%s2568_s30 + $0x778] sm:$0xff] }
 0x11b   : > { %v2261_v45 = vpop.eup %2260  ;;  %1627 = vst [vmem:[%s2645_s17 + $0x688] sm:$0xff] %v1371_v7  ;;  %v1373_v20 = vmul.f32 %v1117_v8, %v3802_v55  ;;  %v1119_v15 = vadd.f32 1.0, %v2259_v40  ;;  %2280 = vtanh.f32 %v3880_v63  ;;  %v3952_v2 = vmul.f32 0.5, %v374_v52  ;;  %v378_v8 = vld [vmem:[%s2568_s30 + $0x780] sm:$0xff] }
 0x11c   : > { %v2263_v50 = vpop.eup %2262  ;;  %1628 = vst [vmem:[%s2645_s17 + $0x690] sm:$0xff] %v1372_v12  ;;  %v1374_v28 = vmul.f32 %v1118_v13, %v3808_v60  ;;  %v1120_v17 = vadd.f32 1.0, %v2261_v45  ;;  %2282 = vtanh.f32 %v3886_v4  ;;  %v3958_v7 = vmul.f32 0.5, %v375_v57  ;;  %v379_v13 = vld [vmem:[%s2568_s30 + $0x788] sm:$0xff] }
 0x11d   : > { %v2265_v55 = vpop.eup %2264  ;;  %1629 = vst [vmem:[%s2645_s17 + $0x698] sm:$0xff] %v1373_v20  ;;  %v1375_v34 = vmul.f32 %v1119_v15, %v3814_v1  ;;  %v1121_v19 = vadd.f32 1.0, %v2263_v50  ;;  %2284 = vtanh.f32 %v3892_v9  ;;  %v3964_v12 = vmul.f32 0.5, %v376_v62  ;;  %v380_v15 = vld [vmem:[%s2568_s30 + $0x790] sm:$0xff] }
 0x11e   : > { %v2267_v60 = vpop.eup %2266  ;;  %1630 = vst [vmem:[%s2645_s17 + $0x6a0] sm:$0xff] %v1374_v28  ;;  %v1376_v39 = vmul.f32 %v1120_v17, %v3820_v6  ;;  %v1122_v21 = vadd.f32 1.0, %v2265_v55  ;;  %2286 = vtanh.f32 %v3898_v14  ;;  %v3970_v20 = vmul.f32 0.5, %v377_v3  ;;  %v381_v17 = vld [vmem:[%s2568_s30 + $0x798] sm:$0xff] }
 0x11f   : > { %v2269_v1 = vpop.eup %2268  ;;  %1631 = vst [vmem:[%s2645_s17 + $0x6a8] sm:$0xff] %v1375_v34  ;;  %v1377_v44 = vmul.f32 %v1121_v19, %v3826_v11  ;;  %v1123_v23 = vadd.f32 1.0, %v2267_v60  ;;  %2288 = vtanh.f32 %v3904_v22  ;;  %v3976_v28 = vmul.f32 0.5, %v378_v8  ;;  %v382_v19 = vld [vmem:[%s2568_s30 + $0x7a0] sm:$0xff] }
 0x120   : > { %v2271_v6 = vpop.eup %2270  ;;  %1632 = vst [vmem:[%s2645_s17 + $0x6b0] sm:$0xff] %v1376_v39  ;;  %v1378_v49 = vmul.f32 %v1122_v21, %v3832_v18  ;;  %v1124_v25 = vadd.f32 1.0, %v2269_v1  ;;  %2290 = vtanh.f32 %v3910_v30  ;;  %v3982_v34 = vmul.f32 0.5, %v379_v13  ;;  %v383_v21 = vld [vmem:[%s2568_s30 + $0x7a8] sm:$0xff] }
 0x121   : > { %v2273_v11 = vpop.eup %2272  ;;  %1633 = vst [vmem:[%s2645_s17 + $0x6b8] sm:$0xff] %v1377_v44  ;;  %v1379_v54 = vmul.f32 %v1123_v23, %v3838_v26  ;;  %v1125_v27 = vadd.f32 1.0, %v2271_v6  ;;  %2292 = vtanh.f32 %v3916_v35  ;;  %v3988_v39 = vmul.f32 0.5, %v380_v15  ;;  %v384_v23 = vld [vmem:[%s2568_s30 + $0x7b0] sm:$0xff] }
 0x122   : > { %v2275_v18 = vpop.eup %2274  ;;  %1634 = vst [vmem:[%s2645_s17 + $0x6c0] sm:$0xff] %v1378_v49  ;;  %v1380_v59 = vmul.f32 %v1124_v25, %v3844_v33  ;;  %v1126_v29 = vadd.f32 1.0, %v2273_v11  ;;  %2294 = vtanh.f32 %v3922_v41  ;;  %v3994_v44 = vmul.f32 0.5, %v381_v17  ;;  %v385_v25 = vld [vmem:[%s2568_s30 + $0x7b8] sm:$0xff] }
 0x123   : > { %v2277_v26 = vpop.eup %2276  ;;  %1635 = vst [vmem:[%s2645_s17 + $0x6c8] sm:$0xff] %v1379_v54  ;;  %v1381_v0 = vmul.f32 %v1125_v27, %v3850_v38  ;;  %v1127_v32 = vadd.f32 1.0, %v2275_v18  ;;  %2296 = vtanh.f32 %v3928_v46  ;;  %v4000_v49 = vmul.f32 0.5, %v382_v19  ;;  %v386_v27 = vld [vmem:[%s2568_s30 + $0x7c0] sm:$0xff] }
 0x124   : > { %v2279_v33 = vpop.eup %2278  ;;  %1636 = vst [vmem:[%s2645_s17 + $0x6d0] sm:$0xff] %v1380_v59  ;;  %v1382_v5 = vmul.f32 %v1126_v29, %v3856_v43  ;;  %v1128_v36 = vadd.f32 1.0, %v2277_v26  ;;  %2298 = vtanh.f32 %v3934_v51  ;;  %v4006_v54 = vmul.f32 0.5, %v383_v21  ;;  %v387_v29 = vld [vmem:[%s2568_s30 + $0x7c8] sm:$0xff] }
 0x125   : > { %v2281_v38 = vpop.eup %2280  ;;  %1637 = vst [vmem:[%s2645_s17 + $0x6d8] sm:$0xff] %v1381_v0  ;;  %v1383_v10 = vmul.f32 %v1127_v32, %v3862_v48  ;;  %v1129_v40 = vadd.f32 1.0, %v2279_v33  ;;  %2300 = vtanh.f32 %v3940_v56  ;;  %v4012_v59 = vmul.f32 0.5, %v384_v23  ;;  %v388_v32 = vld [vmem:[%s2568_s30 + $0x7d0] sm:$0xff] }
 0x126   : > { %v2283_v43 = vpop.eup %2282  ;;  %1638 = vst [vmem:[%s2645_s17 + $0x6e0] sm:$0xff] %v1382_v5  ;;  %v1384_v16 = vmul.f32 %v1128_v36, %v3868_v53  ;;  %v1130_v45 = vadd.f32 1.0, %v2281_v38  ;;  %2302 = vtanh.f32 %v3946_v61  ;;  %v4018_v0 = vmul.f32 0.5, %v385_v25  ;;  %v389_v36 = vld [vmem:[%s2568_s30 + $0x7d8] sm:$0xff] }
 0x127   : > { %v2285_v48 = vpop.eup %2284  ;;  %1639 = vst [vmem:[%s2645_s17 + $0x6e8] sm:$0xff] %v1383_v10  ;;  %v1385_v24 = vmul.f32 %v1129_v40, %v3874_v58  ;;  %v1131_v50 = vadd.f32 1.0, %v2283_v43  ;;  %2304 = vtanh.f32 %v3952_v2  ;;  %v4024_v5 = vmul.f32 0.5, %v386_v27  ;;  %v390_v40 = vld [vmem:[%s2568_s30 + $0x7e0] sm:$0xff] }
 0x128   : > { %v2287_v53 = vpop.eup %2286  ;;  %1640 = vst [vmem:[%s2645_s17 + $0x6f0] sm:$0xff] %v1384_v16  ;;  %v1386_v31 = vmul.f32 %v1130_v45, %v3880_v63  ;;  %v1132_v55 = vadd.f32 1.0, %v2285_v48  ;;  %2306 = vtanh.f32 %v3958_v7  ;;  %v4030_v10 = vmul.f32 0.5, %v387_v29  ;;  %v391_v45 = vld [vmem:[%s2568_s30 + $0x7e8] sm:$0xff] }
 0x129   : > { %v2289_v58 = vpop.eup %2288  ;;  %1641 = vst [vmem:[%s2645_s17 + $0x6f8] sm:$0xff] %v1385_v24  ;;  %v1387_v37 = vmul.f32 %v1131_v50, %v3886_v4  ;;  %v1133_v60 = vadd.f32 1.0, %v2287_v53  ;;  %2308 = vtanh.f32 %v3964_v12  ;;  %v4036_v16 = vmul.f32 0.5, %v388_v32  ;;  %v392_v50 = vld [vmem:[%s2568_s30 + $0x7f0] sm:$0xff] }
 0x12a   : > { %v2291_v63 = vpop.eup %2290  ;;  %1642 = vst [vmem:[%s2645_s17 + $0x700] sm:$0xff] %v1386_v31  ;;  %v1388_v42 = vmul.f32 %v1132_v55, %v3892_v9  ;;  %v1134_v1 = vadd.f32 1.0, %v2289_v58  ;;  %2310 = vtanh.f32 %v3970_v20  ;;  %v4042_v24 = vmul.f32 0.5, %v389_v36  ;;  %v393_v55 = vld [vmem:[%s2568_s30 + $0x7f8] sm:$0xff] }
 0x12b   : > { %v2293_v4 = vpop.eup %2292  ;;  %1643 = vst [vmem:[%s2645_s17 + $0x708] sm:$0xff] %v1387_v37  ;;  %v1389_v47 = vmul.f32 %v1133_v60, %v3898_v14  ;;  %v1135_v6 = vadd.f32 1.0, %v2291_v63  ;;  %2312 = vtanh.f32 %v3976_v28  ;;  %v4048_v31 = vmul.f32 0.5, %v390_v40 }
 0x12c   : > { %v2295_v9 = vpop.eup %2294  ;;  %1644 = vst [vmem:[%s2645_s17 + $0x710] sm:$0xff] %v1388_v42  ;;  %v1390_v52 = vmul.f32 %v1134_v1, %v3904_v22  ;;  %v1136_v11 = vadd.f32 1.0, %v2293_v4  ;;  %2314 = vtanh.f32 %v3982_v34  ;;  %v4054_v37 = vmul.f32 0.5, %v391_v45 }
 0x12d   : > { %v2297_v14 = vpop.eup %2296  ;;  %1645 = vst [vmem:[%s2645_s17 + $0x718] sm:$0xff] %v1389_v47  ;;  %v1391_v57 = vmul.f32 %v1135_v6, %v3910_v30  ;;  %v1137_v18 = vadd.f32 1.0, %v2295_v9  ;;  %2316 = vtanh.f32 %v3988_v39  ;;  %v4059_v63 = vmul.f32 0.5, %v392_v50 }
 0x12e   : > { %v2299_v22 = vpop.eup %2298  ;;  %1646 = vst [vmem:[%s2645_s17 + $0x720] sm:$0xff] %v1390_v52  ;;  %v1392_v62 = vmul.f32 %v1136_v11, %v3916_v35  ;;  %v1138_v26 = vadd.f32 1.0, %v2297_v14  ;;  %2318 = vtanh.f32 %v3994_v44  ;;  %v4064_v23 = vmul.f32 0.5, %v393_v55 }
 0x12f   : > { %v2301_v30 = vpop.eup %2300  ;;  %1647 = vst [vmem:[%s2645_s17 + $0x728] sm:$0xff] %v1391_v57  ;;  %v1393_v3 = vmul.f32 %v1137_v18, %v3922_v41  ;;  %v1139_v33 = vadd.f32 1.0, %v2299_v22  ;;  %2320 = vtanh.f32 %v4000_v49 }
 0x130   : > { %v2303_v35 = vpop.eup %2302  ;;  %1648 = vst [vmem:[%s2645_s17 + $0x730] sm:$0xff] %v1392_v62  ;;  %v1394_v8 = vmul.f32 %v1138_v26, %v3928_v46  ;;  %v1140_v38 = vadd.f32 1.0, %v2301_v30  ;;  %2322 = vtanh.f32 %v4006_v54 }
 0x131   : > { %v2305_v41 = vpop.eup %2304  ;;  %1649 = vst [vmem:[%s2645_s17 + $0x738] sm:$0xff] %v1393_v3  ;;  %v1395_v13 = vmul.f32 %v1139_v33, %v3934_v51  ;;  %v1141_v43 = vadd.f32 1.0, %v2303_v35  ;;  %2324 = vtanh.f32 %v4012_v59 }
 0x132   : > { %v2307_v46 = vpop.eup %2306  ;;  %1650 = vst [vmem:[%s2645_s17 + $0x740] sm:$0xff] %v1394_v8  ;;  %v1396_v15 = vmul.f32 %v1140_v38, %v3940_v56  ;;  %v1142_v48 = vadd.f32 1.0, %v2305_v41  ;;  %2326 = vtanh.f32 %v4018_v0 }
 0x133   : > { %v2309_v51 = vpop.eup %2308  ;;  %1651 = vst [vmem:[%s2645_s17 + $0x748] sm:$0xff] %v1395_v13  ;;  %v1397_v17 = vmul.f32 %v1141_v43, %v3946_v61  ;;  %v1143_v53 = vadd.f32 1.0, %v2307_v46  ;;  %2328 = vtanh.f32 %v4024_v5 }
 0x134   : > { %v2311_v19 = vpop.eup %2310  ;;  %1652 = vst [vmem:[%s2645_s17 + $0x750] sm:$0xff] %v1396_v15  ;;  %v1398_v56 = vmul.f32 %v1142_v48, %v3952_v2  ;;  %v1144_v58 = vadd.f32 1.0, %v2309_v51  ;;  %2330 = vtanh.f32 %v4030_v10 }
 0x135   : > { %v2313_v60 = vpop.eup %2312  ;;  %1653 = vst [vmem:[%s2645_s17 + $0x758] sm:$0xff] %v1397_v17  ;;  %v1399_v61 = vmul.f32 %v1143_v53, %v3958_v7  ;;  %v1145_v21 = vadd.f32 1.0, %v2311_v19  ;;  %2332 = vtanh.f32 %v4036_v16 }
 0x136   : > { %v2315_v42 = vpop.eup %2314  ;;  %1654 = vst [vmem:[%s2645_s17 + $0x760] sm:$0xff] %v1398_v56  ;;  %v1400_v2 = vmul.f32 %v1144_v58, %v3964_v12  ;;  %v1146_v1 = vadd.f32 1.0, %v2313_v60  ;;  %2334 = vtanh.f32 %v4042_v24 }
 0x137   : > { %v2317_v4 = vpop.eup %2316  ;;  %1655 = vst [vmem:[%s2645_s17 + $0x768] sm:$0xff] %v1399_v61  ;;  %v1401_v7 = vmul.f32 %v1145_v21, %v3970_v20  ;;  %v1147_v47 = vadd.f32 1.0, %v2315_v42  ;;  %2336 = vtanh.f32 %v4048_v31 }
 0x138   : > { %v2319_v6 = vpop.eup %2318  ;;  %1656 = vst [vmem:[%s2645_s17 + $0x770] sm:$0xff] %v1400_v2  ;;  %v1402_v25 = vmul.f32 %v1146_v1, %v3976_v28  ;;  %v1148_v9 = vadd.f32 1.0, %v2317_v4  ;;  %2338 = vtanh.f32 %v4054_v37 }
 0x139   : > { %v2321_v12 = vpop.eup %2320  ;;  %1657 = vst [vmem:[%s2645_s17 + $0x778] sm:$0xff] %v1401_v7  ;;  %v1403_v52 = vmul.f32 %v1147_v47, %v3982_v34  ;;  %v1149_v11 = vadd.f32 1.0, %v2319_v6  ;;  %2340 = vtanh.f32 %v4059_v63 }
 0x13a   : > { %v2323_v20 = vpop.eup %2322  ;;  %1658 = vst [vmem:[%s2645_s17 + $0x780] sm:$0xff] %v1402_v25  ;;  %v1404_v27 = vmul.f32 %v1148_v9, %v3988_v39  ;;  %v1150_v14 = vadd.f32 1.0, %v2321_v12  ;;  %2342 = vtanh.f32 %v4064_v23 }
 0x13b   : > { %v2325_v28 = vpop.eup %2324  ;;  %1659 = vst [vmem:[%s2645_s17 + $0x788] sm:$0xff] %v1403_v52  ;;  %v1405_v57 = vmul.f32 %v1149_v11, %v3994_v44  ;;  %v1151_v18 = vadd.f32 1.0, %v2323_v20 }
 0x13c   : > { %v2327_v29 = vpop.eup %2326  ;;  %1660 = vst [vmem:[%s2645_s17 + $0x790] sm:$0xff] %v1404_v27  ;;  %v1406_v34 = vmul.f32 %v1150_v14, %v4000_v49  ;;  %v1152_v22 = vadd.f32 1.0, %v2325_v28 }
 0x13d   : > { %v2329_v62 = vpop.eup %2328  ;;  %1661 = vst [vmem:[%s2645_s17 + $0x798] sm:$0xff] %v1405_v57  ;;  %v1407_v39 = vmul.f32 %v1151_v18, %v4006_v54  ;;  %v1153_v26 = vadd.f32 1.0, %v2327_v29 }
 0x13e   : > { %v2331_v32 = vpop.eup %2330  ;;  %1662 = vst [vmem:[%s2645_s17 + $0x7a0] sm:$0xff] %v1406_v34  ;;  %v1408_v30 = vmul.f32 %v1152_v22, %v4012_v59  ;;  %v1154_v3 = vadd.f32 1.0, %v2329_v62 }
 0x13f   : > { %v2333_v44 = vpop.eup %2332  ;;  %1663 = vst [vmem:[%s2645_s17 + $0x7a8] sm:$0xff] %v1407_v39  ;;  %v1409_v33 = vmul.f32 %v1153_v26, %v4018_v0  ;;  %v1155_v36 = vadd.f32 1.0, %v2331_v32 }
 0x140   : > { %v2335_v49 = vpop.eup %2334  ;;  %1664 = vst [vmem:[%s2645_s17 + $0x7b0] sm:$0xff] %v1408_v30  ;;  %v1410_v35 = vmul.f32 %v1154_v3, %v4024_v5  ;;  %v1156_v54 = vadd.f32 1.0, %v2333_v44 }
 0x141   : > { %v2337_v8 = vpop.eup %2336  ;;  %1665 = vst [vmem:[%s2645_s17 + $0x7b8] sm:$0xff] %v1409_v33  ;;  %v1411_v38 = vmul.f32 %v1155_v36, %v4030_v10  ;;  %v1157_v59 = vadd.f32 1.0, %v2335_v49 }
 0x142   : > { %v2339_v40 = vpop.eup %2338  ;;  %1666 = vst [vmem:[%s2645_s17 + $0x7c0] sm:$0xff] %v1410_v35  ;;  %v1412_v0 = vmul.f32 %v1156_v54, %v4036_v16  ;;  %v1158_v41 = vadd.f32 1.0, %v2337_v8 }
 0x143   : > { %v2341_v13 = vpop.eup %2340  ;;  %1667 = vst [vmem:[%s2645_s17 + $0x7c8] sm:$0xff] %v1411_v38  ;;  %v1413_v43 = vmul.f32 %v1157_v59, %v4042_v24  ;;  %v1159_v5 = vadd.f32 1.0, %v2339_v40 }
 0x144   : > { %v2343_v10 = vpop.eup %2342  ;;  %1668 = vst [vmem:[%s2645_s17 + $0x7d0] sm:$0xff] %v1412_v0  ;;  %v1414_v45 = vmul.f32 %v1158_v41, %v4048_v31  ;;  %v1160_v46 = vadd.f32 1.0, %v2341_v13 }
 0x145   : > { %1669 = vst [vmem:[%s2645_s17 + $0x7d8] sm:$0xff] %v1413_v43  ;;  %v1415_v16 = vmul.f32 %v1159_v5, %v4054_v37  ;;  %v1161_v15 = vadd.f32 1.0, %v2343_v10 }
 0x146   : > { %1670 = vst [vmem:[%s2645_s17 + $0x7e0] sm:$0xff] %v1414_v45  ;;  %v1416_v48 = vmul.f32 %v1160_v46, %v4059_v63 }
 0x147   : > { %1671 = vst [vmem:[%s2645_s17 + $0x7e8] sm:$0xff] %v1415_v16  ;;  %v1417_v24 = vmul.f32 %v1161_v15, %v4064_v23 }
 0x148   : > { %1672 = vst [vmem:[%s2645_s17 + $0x7f0] sm:$0xff] %v1416_v48 }
 0x149   : > { %1673 = vst [vmem:[%s2645_s17 + $0x7f8] sm:$0xff] %v1417_v24 }
 0x14a   : > { %2387 = shalt.err (!%p2384_p2)
}
 0x14b   : > { %s2388_s13 = scalar_lea.hbm %s4107_s10, 32768  ;;  %s2392_s20 = scalar_lea.hbm %s4158_s1, 65536 }
 0x14c   : > { %p2389_p4 = scmp.ne.s32.totalorder %s4107_s10, %s2388_s13  ;;  %p2393_p9 = scmp.lt.u32.totalorder %s4107_s10, %s4158_s1 }
 0x14d   : > { %p2394_p1 = scmp.lt.u32.totalorder %s2392_s20, %s2388_s13  ;;  %p2396_p6 = scmp.lt.u32.totalorder %s2388_s13, %s4107_s10 }
 0x14e   : > { %p2390_p5 = pnand %p2389_p4, %p4165_p11 }
 0x14f   : > { %p2395_p3 = por %p2394_p1, %p2393_p9 }
 0x150   : > { %p2391_p7 = pneg %p2390_p5 }
 0x151   : > { %p2397_p12 = por %p2396_p6, %p2395_p3 }
 0x153   : > { %p2398_p13 = pnand %p2397_p12, %p2391_p7 }
 0x155   : > { %2401 = shalt.err (!%p2398_p13)
}
 0x156   : > { %s2446_s24 = smov 2048   ;;  %s2447_s26 = smov 128  }
 0x157   : > { %1784 = dma.vmem_to_hbm [thread:$0]  (%p4165_p11), %s4109_s27, 32768, %s4107_s10, %s1675_s2, %s2446_s24, %s2446_s24, %s2447_s26  }
 0x158 PF: > { %s1704_s30 = sand.u32 1, %s2428_s6   ;;  %p4166_p8 = scmp.ne.s32.totalorder %s4163_s19, 0 }
 0x159   : > { %p4167_p10 = scmp.ge.s32.totalorder %s2440_s9, 2  ;;  %s1705_s17 = scalar_lea.sflag [#allocation4], %s1704_s30 }
 0x15b   : > { %p1791_p0 = pnand %p4167_p10, %p4166_p8 }
 0x15d   : > { %2423 = dma.done.wait (!%p1791_p0), %s1705_s17, 32768  }
 0x15e   : > { %2425 = vsyncadd (!%p1791_p0), %s1705_s17, 4294934528  ;;  %p14_p2 = scmp.ge.s32.totalorder %s2483_s12, 4   ;;  %s4168_s6 = smov %s2432_s7 }
 0x15f   : > { %s4169_s7 = smov %s2436_s8  ;;  %s4170_s8 = smov %s2495_s15 }
 0x160   : > { %s4171_s9 = smov %s2483_s12  ;;  %16 = sbr.rel (!%p14_p2) target bundleno = 5 (0x5), region = 69 }
 0x167   :  { %1710 = vsyncpa [#allocation3], 1 }
 0x168   :  { %1712 = vsyncpa [#allocation3 + $0x1], 1 }
 0x169   :  { %1713 = vsyncpa [#allocation4], 1 }
 0x16a   :  { %1715 = vsyncpa [#allocation4 + $0x1], 1 }

</bundles_post_ra>
